<compile_context>
chip_gen: v5e
topology: v5e:2x2
jax: 0.10.0
libtpu: 0.0.40
codegen_flags: <defaults>
</compile_context>

<pallas_src>
import functools

import jax
import jax.numpy as jnp
from jax import lax
from jax.experimental import pallas as pl
from jax.experimental.pallas import tpu as pltpu


def _scale_pred_kernel(xp_ref, w1_ref, bn_bias_ref, w2_ref, b2_ref, o_ref,
                       *, split_ky):
    """One (batch element, row tile) per grid step.

    xp_ref:      (1, H+2, W+2, Cin)    bf16 zero-padded NHWC input (full image)
    w1_ref:      (9*Cin, C2)           bf16 3x3 weight * BN scale, (ky,kx,cin)-major
    bn_bias_ref: (1, C2)               f32  beta - mean * gamma / sqrt(var+eps)
    w2_ref:      (C2, Cout_pad)        bf16 1x1 weight, lane-padded columns
    b2_ref:      (1, Cout_pad)         f32  1x1 bias, lane-padded
    o_ref:       (1, RT, W, Cout_pad)  bf16 NHWC output row tile
    """
    _, RT, W, Cp = o_ref.shape
    Cin = xp_ref.shape[-1]
    C2 = w1_ref.shape[-1]

    # Row-tile offset into the padded image (1-row halo on each side).
    row0 = pl.multiple_of(pl.program_id(1) * RT, RT)
    x_rows = xp_ref[0, pl.ds(row0, RT + 2), :, :]           # (RT+2, W+2, Cin)

    # Only 3 sublane-shifted slabs (one per kx); ky shifts are cheap
    # leading-axis slices.
    slabs = [x_rows[:, dx:dx + W, :] for dx in range(3)]    # 3 x (RT+2, W, Cin)

    if split_ky:
        # VMEM-tight path (large Cin, v7x): three K=3*Cin matmuls accumulated
        # in f32 -> 3x smaller peak im2col residency, same total copy bytes.
        acc = jnp.zeros((RT * W, C2), jnp.float32)
        for dy in range(3):
            patch = jnp.concatenate(
                [slabs[dx][dy:dy + RT] for dx in range(3)],
                axis=-1).reshape(RT * W, 3 * Cin)
            w_dy = w1_ref[dy * 3 * Cin:(dy + 1) * 3 * Cin, :]
            acc = acc + jnp.dot(patch, w_dy, preferred_element_type=jnp.float32)
    else:
        # Single deep-K im2col matmul with K = 9*Cin.
        taps = [slabs[dx][dy:dy + RT] for dy in range(3) for dx in range(3)]
        patch = jnp.concatenate(taps, axis=-1).reshape(RT * W, 9 * Cin)
        acc = jnp.dot(patch, w1_ref[...], preferred_element_type=jnp.float32)

    # BN scale is folded into w1; only the bias remains.  LeakyReLU(0.1) as a
    # single max (no compare+select), all in f32 on the VPU.
    y = acc + bn_bias_ref[...]
    y = jnp.maximum(y, 0.1 * y)

    # conv 1x1 (+bias), lane-dense padded output columns.
    out = jnp.dot(y.astype(w2_ref.dtype), w2_ref[...],
                  preferred_element_type=jnp.float32)
    out = out + b2_ref[...]

    o_ref[...] = out.reshape(1, RT, W, Cp).astype(o_ref.dtype)


def _vmem_limit_bytes():
    """Generation-aware scoped-VMEM limit: ~3/4 of physical capacity."""
    try:
        cap = getattr(pltpu.get_tpu_info(), "vmem_capacity_bytes", None)
        if cap:
            # v5e/v6e (128 MiB) -> 96 MiB; v7x (64 MiB) -> 48 MiB.
            return min(int(cap) * 3 // 4, 96 * 1024 * 1024)
    except Exception:
        pass
    return 32 * 1024 * 1024   # conservative known-good fallback


def _pick_row_tile(H, W, per_row_bytes, budget_bytes, m_cap=2048):
    """Largest divisor RT of H with RT*W <= m_cap and the tile under budget."""
    divisors = [d for d in range(1, H + 1) if H % d == 0]
    rt = divisors[0]
    for d in divisors:
        if d * W <= m_cap and d * per_row_bytes <= budget_bytes:
            rt = max(rt, d)
    return rt


def _scale_prediction_pallas(x_nchw, params, num_classes):
    w1, bn_gamma, bn_beta, bn_mean, bn_var, w2, b2 = (
        params["w1"], params["bn_gamma"], params["bn_beta"],
        params["bn_mean"], params["bn_var"], params["w2"], params["b2"])

    B, Cin, H, W = x_nchw.shape
    C2 = 2 * Cin
    Cout = 3 * (num_classes + 5)
    Cout_pad = ((Cout + 127) // 128) * 128
    eps = 1e-5

    vmem_limit = _vmem_limit_bytes()

    # --- VMEM bookkeeping (bf16 = 2 B, f32 = 4 B) --------------------------
    fixed = 2 * ((H + 2) * (W + 2) * Cin * 2       # padded input block (x2 bufs)
                 + 9 * Cin * C2 * 2                # w1 (x2 bufs, grid-invariant)
                 + C2 * 4                          # bn_bias
                 + C2 * Cout_pad * 2               # w2
                 + Cout_pad * 4)                   # b2
    per_row = W * (9 * Cin * 2                     # im2col patch (bf16)
                   + 2 * C2 * 4 + C2 * 2           # f32 acc + epilogue + bf16 recast
                   + Cout_pad * 4                  # f32 conv2 result
                   + 2 * Cout_pad * 2)             # output block (x2 bufs, bf16)
    budget = int(0.55 * vmem_limit) - fixed

    # Row tile: a divisor of H (exact grid math, no masking), sized so
    # M = RT*W fills the MXU without blowing the VMEM budget.
    RT = _pick_row_tile(H, W, per_row, budget)

    # Split the im2col into 3 per-ky matmuls only when a single patch would be
    # large (big Cin / tight VMEM); keep the single deep-K matmul otherwise.
    split_ky = RT * W * 9 * Cin * 2 > 4 * 1024 * 1024

    # bf16 BEFORE the NCHW->NHWC relayout / zero-pad (halves HBM bytes of the
    # wrapper-side relayout, which matches the kernel's input read).
    x_nhwc = jnp.transpose(x_nchw.astype(jnp.bfloat16), (0, 2, 3, 1))
    x_pad = jnp.pad(x_nhwc, ((0, 0), (1, 1), (1, 1), (0, 0)))

    # Fold BatchNorm (eval) into the conv: the scale goes into w1's output
    # channels (in f32, before the bf16 cast); only the bias survives as a
    # kernel operand.
    bn_scale = bn_gamma / jnp.sqrt(bn_var + eps)             # (C2,)
    bn_bias = (bn_beta - bn_mean * bn_scale).reshape(1, C2)
    w1_flat = (w1 * bn_scale).reshape(9 * Cin, C2).astype(jnp.bfloat16)

    # Lane-pad the 1x1 head so output stores are unmasked (lane-dense) vst.
    w2_pad = jnp.zeros((C2, Cout_pad), jnp.float32).at[:, :Cout].set(w2)
    w2_pad = w2_pad.astype(jnp.bfloat16)
    b2_pad = jnp.zeros((1, Cout_pad), jnp.float32).at[0, :Cout].set(b2)

    kernel = functools.partial(_scale_pred_kernel, split_ky=split_ky)

    out_nhwc = pl.pallas_call(
        kernel,
        out_shape=jax.ShapeDtypeStruct((B, H, W, Cout_pad), jnp.bfloat16),
        grid_spec=pltpu.PrefetchScalarGridSpec(
            num_scalar_prefetch=0,
            grid=(B, H // RT),
            in_specs=[
                pl.BlockSpec((1, H + 2, W + 2, Cin), lambda b, r: (b, 0, 0, 0)),
                pl.BlockSpec((9 * Cin, C2), lambda b, r: (0, 0)),
                pl.BlockSpec((1, C2), lambda b, r: (0, 0)),
                pl.BlockSpec((C2, Cout_pad), lambda b, r: (0, 0)),
                pl.BlockSpec((1, Cout_pad), lambda b, r: (0, 0)),
            ],
            out_specs=pl.BlockSpec((1, RT, W, Cout_pad),
                                   lambda b, r: (b, r, 0, 0)),
        ),
        compiler_params=pltpu.CompilerParams(
            dimension_semantics=("parallel", "parallel"),
            vmem_limit_bytes=vmem_limit),
    )(x_pad, w1_flat, bn_bias, w2_pad, b2_pad)

    # Drop lane padding, then match PyTorch's
    # reshape(B, 3, nc+5, H, W).permute(0, 1, 3, 4, 2).  Done in bf16; cast
    # back to f32 only at the very end.
    out = out_nhwc[..., :Cout].reshape(B, H, W, 3, num_classes + 5)
    return jnp.transpose(out, (0, 3, 1, 2, 4)).astype(jnp.float32)


def _reference_forward(x_nchw, params, num_classes):
    """Pure-JAX (XLA, f32) reference mirroring the PyTorch forward."""
    w1, bn_gamma, bn_beta, bn_mean, bn_var, w2, b2 = (
        params["w1"], params["bn_gamma"], params["bn_beta"],
        params["bn_mean"], params["bn_var"], params["w2"], params["b2"])
    eps = 1e-5
    B, Cin, H, W = x_nchw.shape

    y = lax.conv_general_dilated(
        x_nchw, w1, window_strides=(1, 1), padding=((1, 1), (1, 1)),
        dimension_numbers=("NCHW", "HWIO", "NCHW"))
    scale = bn_gamma / jnp.sqrt(bn_var + eps)
    bias = bn_beta - bn_mean * scale
    y = y * scale[None, :, None, None] + bias[None, :, None, None]
    y = jnp.where(y > 0, y, 0.1 * y)
    z = lax.conv_general_dilated(
        y, w2.reshape(1, 1, *w2.shape), window_strides=(1, 1),
        padding=((0, 0), (0, 0)),
        dimension_numbers=("NCHW", "HWIO", "NCHW"))
    z = z + b2[None, :, None, None]
    z = z.reshape(B, 3, num_classes + 5, H, W)
    return jnp.transpose(z, (0, 1, 3, 4, 2))


@functools.partial(jax.jit, static_argnames=("num_classes", "force_pallas"))
def scale_prediction(x_nchw, params, *, num_classes, force_pallas=False):
    """Forward pass of ScalePrediction.

    x_nchw: (B, Cin, H, W) float32 (PyTorch layout)
    returns: (B, 3, H, W, num_classes + 5) float32
    """
    Cin = x_nchw.shape[1]
    # Tiny Cin: with K = 9*Cin < 128 the MXU / input lanes are nearly idle and
    # per-grid-step overhead dominates -- plain XLA is faster there.
    if not force_pallas and 9 * Cin < 128:
        return _reference_forward(x_nchw, params, num_classes)
    return _scale_prediction_pallas(x_nchw, params, num_classes)


def init_params(key, in_channels, num_classes):
    c2 = 2 * in_channels
    cout = 3 * (num_classes + 5)
    k1, k2, k3, k4, k5, k6, k7 = jax.random.split(key, 7)
    return {
        # conv1: 3x3, no bias, stored as (kh, kw, Cin, Cout)
        "w1": 0.1 * jax.random.normal(k1, (3, 3, in_channels, c2), jnp.float32),
        "bn_gamma": 1.0 + 0.1 * jax.random.normal(k2, (c2,), jnp.float32),
        "bn_beta": 0.1 * jax.random.normal(k3, (c2,), jnp.float32),
        "bn_mean": 0.05 * jax.random.normal(k4, (c2,), jnp.float32),
        "bn_var": jnp.abs(1.0 + 0.1 * jax.random.normal(k5, (c2,), jnp.float32)),
        # conv2: 1x1 with bias, stored as (Cin2, Cout)
        "w2": 0.1 * jax.random.normal(k6, (c2, cout), jnp.float32),
        "b2": 0.1 * jax.random.normal(k7, (cout,), jnp.float32),
    }


if __name__ == "__main__":
    B, Cin, H, W = 2, 4, 16, 16
    num_classes = 2

    key = jax.random.PRNGKey(0)
    kx, kp = jax.random.split(key)
    x = jax.random.normal(kx, (B, Cin, H, W), jnp.float32)
    params = init_params(kp, Cin, num_classes)

    # force_pallas=True: the auto dispatcher would route this tiny Cin=4 smoke
    # test to plain XLA; here we explicitly exercise the fused Pallas kernel.
    out = scale_prediction(x, params, num_classes=num_classes, force_pallas=True)
    out = jax.block_until_ready(out)

    expected_shape = (B, 3, H, W, num_classes + 5)
    assert out.shape == expected_shape, (out.shape, expected_shape)

    ref = _reference_forward(x, params, num_classes)
    max_err = float(jnp.max(jnp.abs(out - ref)))
    # bf16 matmul inputs + bf16 output writeback (f32 accumulation) -> loose
    # tolerance vs the f32 reference.
    assert jnp.allclose(out, ref, atol=3e-2, rtol=3e-2), max_err

    print("KERNEL_OK")
</pallas_src>

<mosaic_0001>
module attributes {stable_mosaic.version = 11 : i64} {
  func.func @_scale_pred_kernel(%arg0: i32, %arg1: i32, %arg2: memref<1x18x18x4xbf16, #tpu.memory_space<vmem>>, %arg3: memref<36x8xbf16, #tpu.memory_space<vmem>>, %arg4: memref<1x8xf32, #tpu.memory_space<vmem>>, %arg5: memref<8x128xbf16, #tpu.memory_space<vmem>>, %arg6: memref<1x128xf32, #tpu.memory_space<vmem>>, %arg7: memref<1x16x16x128xbf16, #tpu.memory_space<vmem>>) attributes {dimension_semantics = [#tpu.dimension_semantics<parallel>, #tpu.dimension_semantics<parallel>], iteration_bounds = array<i64: 2, 1>, scalar_prefetch = 0 : i64, scratch_operands = 0 : i64, tpu.core_type = #tpu.core_type<tc>, window_params = [{transform_indices = @transform_0, window_bounds = array<i64: 1, 18, 18, 4>}, {pipeline_mode = #tpu.pipeline_mode<synchronous>, transform_indices = @transform_1, window_bounds = array<i64: 36, 8>}, {pipeline_mode = #tpu.pipeline_mode<synchronous>, transform_indices = @transform_2, window_bounds = array<i64: 1, 8>}, {pipeline_mode = #tpu.pipeline_mode<synchronous>, transform_indices = @transform_3, window_bounds = array<i64: 8, 128>}, {pipeline_mode = #tpu.pipeline_mode<synchronous>, transform_indices = @transform_4, window_bounds = array<i64: 1, 128>}, {transform_indices = @transform_5, window_bounds = array<i64: 1, 16, 16, 128>}]} {
    %c16_i32 = arith.constant 16 : i32
    %0 = arith.muli %arg1, %c16_i32 : i32
    %1 = tpu.assume_multiple %0, 16 : i32
    %c0 = arith.constant 0 : index
    %2 = arith.index_cast %1 : i32 to index
    %c0_0 = arith.constant 0 : index
    %c0_1 = arith.constant 0 : index
    %3 = vector.load %arg2[%c0, %2, %c0_0, %c0_1] : memref<1x18x18x4xbf16, #tpu.memory_space<vmem>>, vector<1x18x18x4xbf16>
    %4 = vector.shape_cast %3 : vector<1x18x18x4xbf16> to vector<18x18x4xbf16>
    %5 = vector.extract_strided_slice %4 {offsets = [0, 0, 0], sizes = [18, 16, 4], strides = [1, 1, 1]} : vector<18x18x4xbf16> to vector<18x16x4xbf16>
    %6 = vector.extract_strided_slice %4 {offsets = [0, 1, 0], sizes = [18, 16, 4], strides = [1, 1, 1]} : vector<18x18x4xbf16> to vector<18x16x4xbf16>
    %7 = vector.extract_strided_slice %4 {offsets = [0, 2, 0], sizes = [18, 16, 4], strides = [1, 1, 1]} : vector<18x18x4xbf16> to vector<18x16x4xbf16>
    %8 = vector.extract_strided_slice %5 {offsets = [0, 0, 0], sizes = [16, 16, 4], strides = [1, 1, 1]} : vector<18x16x4xbf16> to vector<16x16x4xbf16>
    %9 = vector.extract_strided_slice %6 {offsets = [0, 0, 0], sizes = [16, 16, 4], strides = [1, 1, 1]} : vector<18x16x4xbf16> to vector<16x16x4xbf16>
    %10 = vector.extract_strided_slice %7 {offsets = [0, 0, 0], sizes = [16, 16, 4], strides = [1, 1, 1]} : vector<18x16x4xbf16> to vector<16x16x4xbf16>
    %11 = vector.extract_strided_slice %5 {offsets = [1, 0, 0], sizes = [16, 16, 4], strides = [1, 1, 1]} : vector<18x16x4xbf16> to vector<16x16x4xbf16>
    %12 = vector.extract_strided_slice %6 {offsets = [1, 0, 0], sizes = [16, 16, 4], strides = [1, 1, 1]} : vector<18x16x4xbf16> to vector<16x16x4xbf16>
    %13 = vector.extract_strided_slice %7 {offsets = [1, 0, 0], sizes = [16, 16, 4], strides = [1, 1, 1]} : vector<18x16x4xbf16> to vector<16x16x4xbf16>
    %14 = vector.extract_strided_slice %5 {offsets = [2, 0, 0], sizes = [16, 16, 4], strides = [1, 1, 1]} : vector<18x16x4xbf16> to vector<16x16x4xbf16>
    %15 = vector.extract_strided_slice %6 {offsets = [2, 0, 0], sizes = [16, 16, 4], strides = [1, 1, 1]} : vector<18x16x4xbf16> to vector<16x16x4xbf16>
    %16 = vector.extract_strided_slice %7 {offsets = [2, 0, 0], sizes = [16, 16, 4], strides = [1, 1, 1]} : vector<18x16x4xbf16> to vector<16x16x4xbf16>
    %17 = tpu.concatenate %8, %9, %10, %11, %12, %13, %14, %15, %16 in 2 : vector<16x16x4xbf16>, vector<16x16x4xbf16>, vector<16x16x4xbf16>, vector<16x16x4xbf16>, vector<16x16x4xbf16>, vector<16x16x4xbf16>, vector<16x16x4xbf16>, vector<16x16x4xbf16>, vector<16x16x4xbf16> -> vector<16x16x36xbf16>
    %18 = vector.shape_cast %17 : vector<16x16x36xbf16> to vector<256x36xbf16>
    %c0_2 = arith.constant 0 : index
    %c0_3 = arith.constant 0 : index
    %19 = vector.load %arg3[%c0_2, %c0_3] : memref<36x8xbf16, #tpu.memory_space<vmem>>, vector<36x8xbf16>
    %cst = arith.constant dense<0.000000e+00> : vector<256x8xf32>
    %20 = tpu.matmul %18, %19, %cst {dimension_numbers = #tpu.dot_dimension_numbers<[1], [0], [0], [1], [0, 0, 1, 1], [], []>} : vector<256x36xbf16>, vector<36x8xbf16>, vector<256x8xf32> -> vector<256x8xf32>
    %c0_4 = arith.constant 0 : index
    %c0_5 = arith.constant 0 : index
    %21 = vector.load %arg4[%c0_4, %c0_5] : memref<1x8xf32, #tpu.memory_space<vmem>>, vector<1x8xf32>
    %22 = vector.broadcast %21 : vector<1x8xf32> to vector<256x8xf32>
    %23 = arith.addf %20, %22 : vector<256x8xf32>
    %cst_6 = arith.constant 1.000000e-01 : f32
    %24 = vector.broadcast %cst_6 : f32 to vector<256x8xf32>
    %25 = arith.mulf %24, %23 : vector<256x8xf32>
    %26 = arith.maximumf %23, %25 : vector<256x8xf32>
    %27 = arith.truncf %26 : vector<256x8xf32> to vector<256x8xbf16>
    %c0_7 = arith.constant 0 : index
    %c0_8 = arith.constant 0 : index
    %28 = vector.load %arg5[%c0_7, %c0_8] : memref<8x128xbf16, #tpu.memory_space<vmem>>, vector<8x128xbf16>
    %cst_9 = arith.constant dense<0.000000e+00> : vector<256x128xf32>
    %29 = tpu.matmul %27, %28, %cst_9 {dimension_numbers = #tpu.dot_dimension_numbers<[1], [0], [0], [1], [0, 0, 1, 1], [], []>} : vector<256x8xbf16>, vector<8x128xbf16>, vector<256x128xf32> -> vector<256x128xf32>
    %c0_10 = arith.constant 0 : index
    %c0_11 = arith.constant 0 : index
    %30 = vector.load %arg6[%c0_10, %c0_11] : memref<1x128xf32, #tpu.memory_space<vmem>>, vector<1x128xf32>
    %31 = vector.broadcast %30 : vector<1x128xf32> to vector<256x128xf32>
    %32 = arith.addf %29, %31 : vector<256x128xf32>
    %33 = vector.shape_cast %32 : vector<256x128xf32> to vector<1x16x16x128xf32>
    %34 = arith.truncf %33 : vector<1x16x16x128xf32> to vector<1x16x16x128xbf16>
    %c0_12 = arith.constant 0 : index
    %c0_13 = arith.constant 0 : index
    %c0_14 = arith.constant 0 : index
    %c0_15 = arith.constant 0 : index
    %35 = vector.load %arg7[%c0_12, %c0_13, %c0_14, %c0_15] : memref<1x16x16x128xbf16, #tpu.memory_space<vmem>>, vector<1x16x16x128xbf16>
    tpu.vector_store %arg7[%c0_12, %c0_13, %c0_14, %c0_15], %34 {strides = array<i32>} : memref<1x16x16x128xbf16, #tpu.memory_space<vmem>>, vector<1x16x16x128xbf16>,
    return
  }
  func.func @transform_0(%arg0: i32, %arg1: i32) -> (i32, i32, i32, i32) {
    %c0_i32 = arith.constant 0 : i32
    %c0_i32_0 = arith.constant 0 : i32
    %c0_i32_1 = arith.constant 0 : i32
    %c0_i32_2 = arith.constant 0 : i32
    return %arg0, %c0_i32, %c0_i32_0, %c0_i32_1 : i32, i32, i32, i32
  }
  func.func @transform_1(%arg0: i32, %arg1: i32) -> (i32, i32) {
    %c0_i32 = arith.constant 0 : i32
    %c0_i32_0 = arith.constant 0 : i32
    %c0_i32_1 = arith.constant 0 : i32
    return %c0_i32, %c0_i32_0 : i32, i32
  }
  func.func @transform_2(%arg0: i32, %arg1: i32) -> (i32, i32) {
    %c0_i32 = arith.constant 0 : i32
    %c0_i32_0 = arith.constant 0 : i32
    %c0_i32_1 = arith.constant 0 : i32
    return %c0_i32, %c0_i32_0 : i32, i32
  }
  func.func @transform_3(%arg0: i32, %arg1: i32) -> (i32, i32) {
    %c0_i32 = arith.constant 0 : i32
    %c0_i32_0 = arith.constant 0 : i32
    %c0_i32_1 = arith.constant 0 : i32
    return %c0_i32, %c0_i32_0 : i32, i32
  }
  func.func @transform_4(%arg0: i32, %arg1: i32) -> (i32, i32) {
    %c0_i32 = arith.constant 0 : i32
    %c0_i32_0 = arith.constant 0 : i32
    %c0_i32_1 = arith.constant 0 : i32
    return %c0_i32, %c0_i32_0 : i32, i32
  }
  func.func @transform_5(%arg0: i32, %arg1: i32) -> (i32, i32, i32, i32) {
    %c0_i32 = arith.constant 0 : i32
    %c0_i32_0 = arith.constant 0 : i32
    %c0_i32_1 = arith.constant 0 : i32
    return %arg0, %arg1, %c0_i32, %c0_i32_0 : i32, i32, i32, i32
  }
}

</mosaic_0001>

<bundles_post_ra>
// kernel: scale_prediction.1
= control target key start
LH: loop header
LB: loop body
LE: loop exit
PB: predicated region body
PF: predicated region fallthrough
CT: control target
= control target key end

     0   :  { %s2115_s18 = smov 0   ;;  %s2117_s19 = smov 0   ;;  %s2944_s0 = inlined_call_operand.vmem [shape: bf16[2,18,18,4], index: 0, kind: input, shape index: {}]   ;;  %s2945_s1 = inlined_call_operand.vmem [shape: bf16[36,8], index: 1, kind: input, shape index: {}]   ;;  %s2946_s2 = inlined_call_operand.vmem [shape: f32[1,8], index: 2, kind: input, shape index: {}]   ;;  %s2947_s3 = inlined_call_operand.vmem [shape: bf16[8,128], index: 3, kind: input, shape index: {}]   ;;  %s2948_s4 = inlined_call_operand.vmem [shape: f32[1,128], index: 4, kind: input, shape index: {}]   ;;  %s2949_s5 = inlined_call_operand.vmem [shape: bf16[2,16,16,128], index: 5, kind: output, shape index: {}]  }
   0x1   :  { %s2119_s20 = smov 0  }
   0x2 LB: > { %s27_s21 = sadd.s32 1, %s2071_s19  ;;  %p1778_p0 = scmp.ge.s32.totalorder %s2075_s20, 1  ;;  %s2075_s20 = sphi %s2119_s20, %s15_s20   ;;  %s2071_s19 = sphi %s2117_s19, %s2951_s19   ;;  %s2067_s18 = sphi %s2115_s18, %s2950_s18  }
   0x3   : > { %p29_p1 = scmp.ge.s32.totalorder %s27_s21, 2  ;;  %p201_p2 = scmp.lt.s32.totalorder %s2075_s20, 3 }
   0x5   : > { %s2953_s21 = smov (%p29_p1, %s27_s21), 0  ;;  %p202_p3 = pnand %p1778_p0, %p201_p2 }
   0x6   : > { %p234_p4 = scmp.lt.s32.totalorder (!%p202_p3), %s2067_s18, 1  ;;  %s2077_s26 = smov (!%p202_p3), 12  }
   0x7   : > { %205 = sbr.rel (%p202_p3) target bundleno = 770 (0x302), region = 40  ;;  %s2078_s27 = smov (!%p202_p3), 8  }
   0x8   : > { %s2079_s28 = smov (!%p202_p3), 24   ;;  %s2080_s29 = smov (!%p202_p3), 20  }
   0x9   : > { %s2081_s30 = smov (!%p202_p3), 16   ;;  %s2082_s6 = smov (!%p202_p3), 4  }
   0xa   : > { %s2083_s7 = smov (!%p202_p3), 28   ;;  %s2084_s8 = smov (!%p202_p3), 32  }
   0xc   : > { %s2955_s18 = smov (!%p234_p4, %s2067_s18), 1  ;;  %vm662_vm0 = vcmask 1046528   ;;  %vm437_vm1 = vsmask.f32 7424  ;;  %vm1302_vm2 = vcmask 1041408   ;;  %vm981_vm3 = vcmask 31744  }
   0xd   : > { %s2016_s22 = smul.u32 216, %s2955_s18  ;;  %vm1014_vm4 = vcmask 64512   ;;  %vm1080_vm5 = vcmask 130048   ;;  %vm1047_vm6 = vcmask 97280   ;;  %vm1113_vm7 = vcmask 162816  }
   0xe   : > { %vm1146_vm8 = vcmask 195584   ;;  %vm1179_vm9 = vcmask 228352   ;;  %vm1212_vm10 = vcmask 261120   ;;  %vm1269_vm11 = vcmask 293888  }
   0xf   : > { %s2139_s25 = scalar_lea.vmem %s2944_s0, %s2016_s22  ;;  %vm1528_vm12 = vcmask 1043456  }
  0x10   : > { %v2142_v0 = vld [vmem:[%s2139_s25 + $0xc] sm:$0xff]  ;;  %v2145_v1 = vld [vmem:[%s2139_s25] sm:$0xff]  ;;  %v257_v2 = vld [vmem:[%s2139_s25 + $0x8] sm:$0x1] }
  0x11   : > { %v405_v3 = vunpack.c.l.b16 %v257_v2  ;;  %v281_v4 = vld [vmem:[%s2139_s25 + $0x68] sm:$0x1]  ;;  %748 = vrot.lane.b32.xlu1 %v2142_v0, %s2077_s26  ;;  %v260_v6 = vld [vmem:[%s2139_s25 + $0x14] sm:$0x1]  ;;  %v663_v8 = vrot.slane %v2145_v1, 1  ;;  %v453_v10 = vshll.u32 %v2142_v0, 16 }
  0x12   : > { %v413_v5 = vunpack.c.l.b16 %v281_v4  ;;  %v406_v9 = vunpack.c.l.b16 %v260_v6  ;;  %v284_v11 = vld [vmem:[%s2139_s25 + $0x74] sm:$0x1]  ;;  %v2156_v13 = vld [vmem:[%s2139_s25 + $0x60] sm:$0xff]  ;;  %v666_v16 = vrot.slane %v2142_v0, 1  ;;  %v2160_v17 = vld [vmem:[%s2139_s25 + $0x18] sm:$0xff]  ;;  %v451_v18 = vshrl.u32 %v2142_v0, 16 }
  0x13   : > { %v421_v7 = vpack.c.b16 %v405_v3, %v405_v3  ;;  %v2164_v19 = vld [vmem:[%s2139_s25 + $0x6c] sm:$0xff]  ;;  %v414_v20 = vunpack.c.l.b16 %v284_v11  ;;  %v455_v22 = vrot.slane %v453_v10, 1  ;;  %v687_v25 = vrot.slane %v2156_v13, 1  ;;  %v263_v31 = vld [vmem:[%s2139_s25 + $0x20] sm:$0x1]  ;;  %v2207_v2 = vld [vmem:[%s2139_s25 + $0x78] sm:$0xff] }
  0x14   : > { %v429_v14 = vpack.c.b16 %v413_v5, %v413_v5  ;;  %v422_v15 = vpack.c.b16 %v406_v9, %v406_v9  ;;  %v441_v28 = vshll.u32 %v2145_v1, 16  ;;  %v549_v30 = vshll.u32 %v2164_v19, 16  ;;  %v287_v59 = vld [vmem:[%s2139_s25 + $0x80] sm:$0x1] }
  0x15   : > { %v664_v12 = vrot.slane %v421_v7, 1  ;;  %v2177_v29 = vpack.c.b16 %v414_v20, %v414_v20  ;;  %v456_v32 = vor.u32 %v455_v22, %v451_v18  ;;  %v537_v34 = vshll.u32 %v2156_v13, 16 }
  0x16   : > { %v458_v23 = vshll.u32 %v422_v15, 16  ;;  %v667_v24 = vrot.slane %v422_v15, 1  ;;  %v688_v26 = vrot.slane %v429_v14, 1  ;;  %v439_v35 = vshrl.u32 %v2145_v1, 16 }
  0x17   : > { %v665_v21 = vsel %vm662_vm0, %v663_v8, %v664_v12  ;;  %v443_v37 = vrot.slane %v441_v28, 1  ;;  %v446_v38 = vshll.u32 %v421_v7, 16  ;;  %v407_v39 = vunpack.c.l.b16 %v263_v31 }
  0x18   : > { %711 = vrot.lane.b32.xlu0 %v665_v21, %s2078_s27  ;;  %v2170_v27 = vsel %vm662_vm0, %v666_v16, %v667_v24  ;;  %v460_v33 = vrot.slane %v458_v23, 1  ;;  %v2184_v36 = vsel %vm662_vm0, %v687_v25, %v688_v26  ;;  %v547_v40 = vshrl.u32 %v2164_v19, 16  ;;  %v266_v24 = vld [vmem:[%s2139_s25 + $0x2c] sm:$0x1]  ;;  %v2247_v26 = vld [vmem:[%s2139_s25 + $0x24] sm:$0xff] }
  0x19   : > { %867 = vrot.lane.b32.xlu1 %v2160_v17, %s2079_s28  ;;  %830 = vrot.lane.b32.xlu2 %v2170_v27, %s2080_s29  ;;  %v551_v41 = vrot.slane %v549_v30, 1  ;;  %v554_v42 = vshll.u32 %v2177_v29, 16  ;;  %v535_v44 = vshrl.u32 %v2156_v13, 16  ;;  %v539_v45 = vrot.slane %v537_v34, 1 }
  0x1a   : > { %v461_v43 = vsel %vm437_vm1, %v456_v32, %v460_v33  ;;  %v542_v46 = vshll.u32 %v429_v14, 16  ;;  %v444_v47 = vor.u32 %v443_v37, %v439_v35  ;;  %v448_v48 = vrot.slane %v446_v38, 1  ;;  %v290_v37 = vld [vmem:[%s2139_s25 + $0x8c] sm:$0x1] }
  0x1b   : > { %v423_v49 = vpack.c.b16 %v407_v39, %v407_v39  ;;  %v465_v50 = vshll.u32 %v2160_v17, 16  ;;  %v552_v51 = vor.u32 %v551_v41, %v547_v40  ;;  %v556_v52 = vrot.slane %v554_v42, 1  ;;  %v2274_v39 = vld [vmem:[%s2139_s25 + $0x84] sm:$0xff] }
  0x1c   : > { %v540_v53 = vor.u32 %v539_v45, %v535_v44  ;;  %v544_v54 = vrot.slane %v542_v46, 1  ;;  %v449_v55 = vsel %vm437_vm1, %v444_v47, %v448_v48  ;;  %v463_v56 = vshrl.u32 %v2160_v17, 16 }
  0x1d   : > { %v467_v57 = vrot.slane %v465_v50, 1  ;;  %v470_v58 = vshll.u32 %v423_v49, 16  ;;  %v2200_v60 = vsel %vm437_vm1, %v552_v51, %v556_v52  ;;  %v415_v3 = vunpack.c.l.b16 %v287_v59 }
  0x1e   : > { %v2203_v61 = vsel %vm437_vm1, %v540_v53, %v544_v54  ;;  %v669_v4 = vrot.slane %v2160_v17, 1  ;;  %v670_v5 = vrot.slane %v423_v49, 1  ;;  %v561_v6 = vshll.u32 %v2207_v2, 16  ;;  %v269_v54 = vld [vmem:[%s2139_s25 + $0x38] sm:$0x1] }
  0x1f   : > { %v468_v62 = vor.u32 %v467_v57, %v463_v56  ;;  %v472_v63 = vrot.slane %v470_v58, 1  ;;  %v431_v8 = vpack.c.b16 %v415_v3, %v415_v3  ;;  %v559_v10 = vshrl.u32 %v2207_v2, 16  ;;  %v293_v57 = vld [vmem:[%s2139_s25 + $0x98] sm:$0x1] }
  0x20   : > { %727 = vrot.lane.b32.xlu0 %v2184_v36, %s2078_s27  ;;  %v2219_v9 = vsel %vm662_vm0, %v669_v4, %v670_v5  ;;  %v563_v11 = vrot.slane %v561_v6, 1  ;;  %v690_v14 = vrot.slane %v2164_v19, 1  ;;  %v691_v15 = vrot.slane %v2177_v29, 1  ;;  %v2325_v5 = vld [vmem:[%s2139_s25 + $0x90] sm:$0xff] }
  0x21   : > { %795 = vrot.lane.b32.xlu1 %v461_v43, %s2081_s30  ;;  %764 = vrot.lane.b32.xlu2 %v2164_v19, %s2077_s26  ;;  %v2216_v7 = vsel %vm437_vm1, %v468_v62, %v472_v63  ;;  %v566_v12 = vshll.u32 %v431_v8, 16  ;;  %v693_v22 = vrot.slane %v2207_v2, 1  ;;  %v694_v23 = vrot.slane %v431_v8, 1  ;;  %v1249_v62 = vld [vmem:[%s2945_s1 + $0x10] sm:$0x3] }
  0x22   : > { %v564_v16 = vor.u32 %v563_v11, %v559_v10  ;;  %v2231_v20 = vsel %vm662_vm0, %v690_v14, %v691_v15  ;;  %v408_v28 = vunpack.c.l.b16 %v266_v24  ;;  %v477_v30 = vshll.u32 %v2247_v26, 16 }
  0x23   : > { %v568_v18 = vrot.slane %v566_v12, 1  ;;  %v2244_v25 = vsel %vm662_vm0, %v693_v22, %v694_v23  ;;  %v475_v31 = vshrl.u32 %v2247_v26, 16  ;;  %v416_v38 = vunpack.c.l.b16 %v290_v37 }
  0x24   : > { %v424_v29 = vpack.c.b16 %v408_v28, %v408_v28  ;;  %v479_v32 = vrot.slane %v477_v30, 1  ;;  %v672_v41 = vrot.slane %v2247_v26, 1  ;;  %v696_v44 = vrot.slane %v2274_v39, 1  ;;  %v1915_v30 = vld [vmem:[%s2945_s1] sm:$0xff] }
  0x25   : > { %v2234_v21 = vsel %vm437_vm1, %v564_v16, %v568_v18  ;;  %v432_v40 = vpack.c.b16 %v416_v38, %v416_v38  ;;  %v571_v47 = vshrl.u32 %v2274_v39, 16  ;;  %v409_v56 = vunpack.c.l.b16 %v269_v54 }
  0x26   : > { %v482_v33 = vshll.u32 %v424_v29, 16  ;;  %v480_v34 = vor.u32 %v479_v32, %v475_v31  ;;  %v673_v42 = vrot.slane %v424_v29, 1  ;;  %v1263_v3 = vunpack.c.l.b16 %v1249_v62 }
  0x27   : > { %v697_v45 = vrot.slane %v432_v40, 1  ;;  %v578_v49 = vshll.u32 %v432_v40, 16  ;;  %v425_v63 = vpack.c.b16 %v409_v56, %v409_v56  ;;  %v417_v4 = vunpack.c.l.b16 %v293_v57  ;;  %v2393_v57 = vld [vmem:[%s2139_s25 + $0x3c] sm:$0xff] }
  0x28   : > { %630 = vrot.lane.b32.xlu0 %v449_v55, %s2082_s6  ;;  %v484_v35 = vrot.slane %v482_v33, 1  ;;  %v2286_v46 = vsel %vm662_vm0, %v672_v41, %v673_v42  ;;  %v2311_v55 = vld [vmem:[%s2139_s25 + $0x30] sm:$0xff]  ;;  %v585_v15 = vshll.u32 %v2325_v5, 16  ;;  %v583_v24 = vshrl.u32 %v2325_v5, 16 }
  0x29   : > { %811 = vrot.lane.b32.xlu1 %v2200_v60, %s2081_s30  ;;  %646 = vrot.lane.b32.xlu2 %v2203_v61, %s2082_s6  ;;  %v2290_v50 = vsel %vm662_vm0, %v696_v44, %v697_v45  ;;  %v580_v52 = vrot.slane %v578_v49, 1  ;;  %v489_v58 = vshll.u32 %v2311_v55, 16  ;;  %v487_v6 = vshrl.u32 %v2311_v55, 16  ;;  %v272_v49 = vld [vmem:[%s2139_s25 + $0x44] sm:$0x1] }
  0x2a   : > { %v494_v8 = vshll.u32 %v425_v63, 16  ;;  %v675_v11 = vrot.slane %v2311_v55, 1  ;;  %v676_v12 = vrot.slane %v425_v63, 1  ;;  %v433_v14 = vpack.c.b16 %v417_v4, %v417_v4 }
  0x2b   : > { %v587_v28 = vrot.slane %v585_v15, 1  ;;  %v699_v38 = vrot.slane %v2325_v5, 1  ;;  %v410_v56 = vunpack.c.l.b16 %v272_v49  ;;  %v501_v62 = vshll.u32 %v2393_v57, 16 }
  0x2c   : > { %v496_v18 = vrot.slane %v494_v8, 1  ;;  %v2342_v23 = vsel %vm662_vm0, %v675_v11, %v676_v12  ;;  %v700_v40 = vrot.slane %v433_v14, 1  ;;  %v296_v12 = vld [vmem:[%s2139_s25 + $0xa4] sm:$0x1] }
  0x2d   : > { %v588_v31 = vor.u32 %v587_v28, %v583_v24 }
  0x30   : > { %914 = vrot.lane.b32.xlu0 %v2216_v7, %s2083_s7 }
  0x31   : > { %883 = vrot.lane.b32.xlu1 %v2207_v2, %s2079_s28  ;;  %949 = vrot.lane.b32.xlu2 %v2219_v9, %s2084_s8 }
  0x38   : > { %846 = vrot.lane.b32.xlu0 %v2231_v20, %s2080_s29 }
  0x39   : > { %632 = vrot.lane.b32.xlu1 %v461_v43, %s2082_s6  ;;  %930 = vrot.lane.b32.xlu2 %v2234_v21, %s2083_s7  ;;  %v573_v43 = vshll.u32 %v2274_v39, 16 }
  0x3b   : > { %v575_v48 = vrot.slane %v573_v43, 1  ;;  %v2368_v43 = vsel %vm662_vm0, %v699_v38, %v700_v40 }
  0x3d   : > { %v576_v51 = vor.u32 %v575_v48, %v571_v47 }
  0x3f   : > { %v2299_v53 = vsel %vm437_vm1, %v576_v51, %v580_v52 }
  0x40   : > { %965 = vrot.lane.b32.xlu0 %v2244_v25, %s2084_s8 }
  0x41   : > { %797 = vrot.lane.b32.xlu1 %v2216_v7, %s2081_s30  ;;  %713 = vrot.lane.b32.xlu2 %v2170_v27, %s2078_s27  ;;  %v2264_v27 = vsel %vm437_vm1, %v480_v34, %v484_v35 }
  0x48   : > { %750 = vrot.lane.b32.xlu0 %v2160_v17, %s2077_s26 }
  0x49   : > { %729 = vrot.lane.b32.xlu1 %v2231_v20, %s2078_s27  ;;  %648 = vrot.lane.b32.xlu2 %v2200_v60, %s2082_s6 }
  0x50   : > { %832 = vrot.lane.b32.xlu0 %v2219_v9, %s2080_s29 }
  0x51   : > { %916 = vrot.lane.b32.xlu1 %v2264_v27, %s2083_s7  ;;  %869 = vrot.lane.b32.xlu2 %v2247_v26, %s2079_s28 }
  0x58   : > { %766 = vrot.lane.b32.xlu0 %v2207_v2, %s2077_s26 }
  0x59   : > { %848 = vrot.lane.b32.xlu1 %v2244_v25, %s2080_s29  ;;  %813 = vrot.lane.b32.xlu2 %v2234_v21, %s2081_s30 }
  0x60   : > { %951 = vrot.lane.b32.xlu0 %v2286_v46, %s2084_s8 }
  0x61   : > { %967 = vrot.lane.b32.xlu1 %v2290_v50, %s2084_s8  ;;  %885 = vrot.lane.b32.xlu2 %v2274_v39, %s2079_s28 }
  0x68   : > { %932 = vrot.lane.b32.xlu0 %v2299_v53, %s2083_s7 }
  0x69   : > { %752 = vrot.lane.b32.xlu1 %v2247_v26, %s2077_s26  ;;  %634 = vrot.lane.b32.xlu2 %v2216_v7, %s2082_s6  ;;  %v491_v7 = vrot.slane %v489_v58, 1 }
  0x6b   : > { %v492_v16 = vor.u32 %v491_v7, %v487_v6 }
  0x6d   : > { %v2346_v29 = vsel %vm437_vm1, %v492_v16, %v496_v18  ;;  %v2418_v18 = vld [vmem:[%s2139_s25 + $0x9c] sm:$0xff] }
  0x70   : > { %715 = vrot.lane.b32.xlu0 %v2219_v9, %s2078_s27  ;;  %v1266_v9 = vpack.c.b16 %v1263_v3, %v1263_v3 }
  0x71   : > { %834 = vrot.lane.b32.xlu1 %v2286_v46, %s2080_s29  ;;  %799 = vrot.lane.b32.xlu2 %v2264_v27, %s2081_s30 }
  0x72   : > { %v1304_v10 = vsel %vm1302_vm2, %v1266_v9, 0  ;;  %v499_v9 = vshrl.u32 %v2393_v57, 16 }
  0x73   : > { %v2319_v59 = vpop.permute.xlu2 %830  ;;  %1311 = vmatpush.bf16.msra.mxu0 %v1304_v10  ;;  %2012 = vmatpush.bf16.msra.mxu2 %v1304_v10  ;;  %v503_v10 = vrot.slane %v501_v62, 1 }
  0x75   : > { %v504_v15 = vor.u32 %v503_v10, %v499_v9 }
  0x78   : > { %650 = vrot.lane.b32.xlu0 %v2234_v21, %s2082_s6  ;;  %v1916_v21 = vld [vmem:[%s2945_s1 + $0x8] sm:$0xff] }
  0x79   : > { %768 = vrot.lane.b32.xlu1 %v2274_v39, %s2077_s26  ;;  %731 = vrot.lane.b32.xlu2 %v2244_v25, %s2078_s27  ;;  %v590_v25 = vshll.u32 %v433_v14, 16 }
  0x7a   : > { %1312 = vmatpush.bf16.msra.mxu0 %v1916_v21  ;;  %2013 = vmatpush.bf16.msra.mxu2 %v1916_v21  ;;  %v418_v21 = vunpack.c.l.b16 %v296_v12 }
  0x7b   : > { %v2336_v22 = vpop.permute.xlu2 %764  ;;  %v592_v32 = vrot.slane %v590_v25, 1  ;;  %v678_v25 = vrot.slane %v2393_v57, 1 }
  0x7d   : > { %v2358_v35 = vsel %vm437_vm1, %v588_v31, %v592_v32  ;;  %v597_v31 = vshll.u32 %v2418_v18, 16 }
  0x7e   : > { %1313 = vmatpush.bf16.msra.mxu0 %v1915_v30  ;;  %2014 = vmatpush.bf16.msra.mxu2 %v1915_v30 }
  0x80   : > { %871 = vrot.lane.b32.xlu0 %v2311_v55, %s2079_s28 }
  0x81   : > { %953 = vrot.lane.b32.xlu1 %v2342_v23, %s2084_s8  ;;  %918 = vrot.lane.b32.xlu2 %v2346_v29, %s2083_s7 }
  0x83   : > { %v749_v33 = vpop.permute.xlu1 %748  ;;  %v647_v34 = vpop.permute.xlu2 %646 }
  0x84   : > { %v999_v4 = vsel %vm981_vm3, %v2156_v13, %v647_v34 }
  0x88   : > { %815 = vrot.lane.b32.xlu0 %v2299_v53, %s2081_s30 }
  0x89   : > { %934 = vrot.lane.b32.xlu1 %v2358_v35, %s2083_s7  ;;  %850 = vrot.lane.b32.xlu2 %v2290_v50, %s2080_s29 }
  0x8a   : > { %v712_v37 = vpop.permute.xlu0 %711 }
  0x8b   : > { %v868_v41 = vpop.permute.xlu1 %867  ;;  %v950_v42 = vpop.permute.xlu2 %949 }
  0x90   : > { %887 = vrot.lane.b32.xlu0 %v2325_v5, %s2079_s28 }
  0x91   : > { %717 = vrot.lane.b32.xlu1 %v2286_v46, %s2078_s27  ;;  %969 = vrot.lane.b32.xlu2 %v2368_v43, %s2084_s8 }
  0x92   : > { %v728_v44 = vpop.permute.xlu0 %727 }
  0x93   : > { %v796_v45 = vpop.permute.xlu1 %795  ;;  %v2376_v47 = vpop.permute.xlu2 %930  ;;  %v1032_v14 = vsel %vm1014_vm4, %v999_v4, %v728_v44 }
  0x94   : > { %v1065_v24 = vsel %vm1047_vm6, %v1032_v14, %v2336_v22 }
  0x98   : > { %636 = vrot.lane.b32.xlu0 %v2264_v27, %s2082_s6 }
  0x99   : > { %652 = vrot.lane.b32.xlu1 %v2299_v53, %s2082_s6  ;;  %754 = vrot.lane.b32.xlu2 %v2311_v55, %s2077_s26 }
  0x9a   : > { %v631_v48 = vpop.permute.xlu0 %630 }
  0x9b   : > { %v983_v46 = vsel %vm981_vm3, %v2145_v1, %v631_v48  ;;  %v812_v52 = vpop.permute.xlu1 %811  ;;  %v2388_v27 = vpop.permute.xlu2 %713  ;;  %v426_v1 = vpack.c.b16 %v410_v56, %v410_v56 }
  0x9c   : > { %v1016_v51 = vsel %vm1014_vm4, %v983_v46, %v712_v37  ;;  %v434_v37 = vpack.c.b16 %v418_v21, %v418_v21 }
  0x9d   : > { %v1049_v54 = vsel %vm1047_vm6, %v1016_v51, %v749_v33  ;;  %v506_v11 = vshll.u32 %v426_v1, 16  ;;  %v679_v30 = vrot.slane %v426_v1, 1 }
  0x9e   : > { %v1082_v53 = vsel %vm1080_vm5, %v1049_v54, %v796_v45  ;;  %v602_v44 = vshll.u32 %v434_v37, 16 }
  0x9f   : > { %v1115_v58 = vsel %vm1113_vm7, %v1082_v53, %v2319_v59  ;;  %v508_v16 = vrot.slane %v506_v11, 1  ;;  %v2434_v38 = vsel %vm662_vm0, %v678_v25, %v679_v30  ;;  %v703_v53 = vrot.slane %v434_v37, 1 }
  0xa0   : > { %801 = vrot.lane.b32.xlu0 %v2346_v29, %s2081_s30  ;;  %v1148_v63 = vsel %vm1146_vm8, %v1115_v58, %v868_v41  ;;  %v595_v41 = vshrl.u32 %v2418_v18, 16  ;;  %v604_v51 = vrot.slane %v602_v44, 1 }
  0xa1   : > { %873 = vrot.lane.b32.xlu1 %v2393_v57, %s2079_s28  ;;  %836 = vrot.lane.b32.xlu2 %v2342_v23, %s2080_s29  ;;  %v2431_v22 = vsel %vm437_vm1, %v504_v15, %v508_v16 }
  0xa2   : > { %v915_v3 = vpop.permute.xlu0 %914 }
  0xa3   : > { %v1181_v59 = vsel %vm1179_vm9, %v1148_v63, %v915_v3  ;;  %v884_v6 = vpop.permute.xlu1 %883  ;;  %v2409_v8 = vpop.permute.xlu2 %648  ;;  %v275_v63 = vld [vmem:[%s2139_s25 + $0x50] sm:$0x1] }
  0xa4   : > { %v1214_v7 = vsel %vm1212_vm10, %v1181_v59, %v950_v42  ;;  %v599_v42 = vrot.slane %v597_v31, 1  ;;  %v2463_v59 = vld [vmem:[%s2139_s25 + $0x48] sm:$0xff]  ;;  %v411_v4 = vunpack.c.l.b16 %v275_v63 }
  0xa5   : > { %1862 = vmatmul.msk.bf16.vlgmr.msra.gmra.mxu0 %vm1269_vm11, %v1214_v7  ;;  %v513_v7 = vshll.u32 %v2463_v59, 16  ;;  %v511_v14 = vshrl.u32 %v2463_v59, 16 }
  0xa6   : > { %v600_v46 = vor.u32 %v599_v42, %v595_v41 }
  0xa7   : > { %v515_v15 = vrot.slane %v513_v7, 1 }
  0xa8   : > { %733 = vrot.lane.b32.xlu0 %v2290_v50, %s2078_s27  ;;  %v1098_v50 = vsel %vm1080_vm5, %v1065_v24, %v812_v52  ;;  %v2449_v56 = vsel %vm437_vm1, %v600_v46, %v604_v51 }
  0xa9   : > { %817 = vrot.lane.b32.xlu1 %v2358_v35, %s2081_s30  ;;  %770 = vrot.lane.b32.xlu2 %v2325_v5, %s2077_s26 }
  0xaa   : > { %v847_v28 = vpop.permute.xlu0 %846 }
  0xab   : > { %v1131_v32 = vsel %vm1113_vm7, %v1098_v50, %v847_v28  ;;  %v633_v33 = vpop.permute.xlu1 %632  ;;  %v870_v34 = vpop.permute.xlu2 %869  ;;  %v1001_v50 = vsel %vm981_vm3, %v2164_v19, %v2409_v8 }
  0xac   : > { %v1164_v40 = vsel %vm1146_vm8, %v1131_v32, %v884_v6  ;;  %v985_v9 = vsel %vm981_vm3, %v2142_v0, %v633_v33 }
  0xad   : > { %v1197_v48 = vsel %vm1179_vm9, %v1164_v40, %v2376_v47  ;;  %v702_v47 = vrot.slane %v2418_v18, 1  ;;  %v1018_v12 = vsel %vm1014_vm4, %v985_v9, %v2388_v27  ;;  %v516_v27 = vor.u32 %v515_v15, %v511_v14 }
  0xaf   : > { %v2460_v3 = vsel %vm662_vm0, %v702_v47, %v703_v53 }
  0xb0   : > { %920 = vrot.lane.b32.xlu0 %v2431_v22, %s2083_s7 }
  0xb1   : > { %889 = vrot.lane.b32.xlu1 %v2418_v18, %s2079_s28  ;;  %955 = vrot.lane.b32.xlu2 %v2434_v38, %s2084_s8 }
  0xb2   : > { %v966_v45 = vpop.permute.xlu0 %965 }
  0xb3   : > { %v1230_v49 = vsel %vm1212_vm10, %v1197_v48, %v966_v45  ;;  %v798_v52 = vpop.permute.xlu1 %797  ;;  %v814_v54 = vpop.permute.xlu2 %813  ;;  %v2512_v45 = vld [vmem:[%s2139_s25 + $0xa8] sm:$0xff] }
  0xb4   : > { %1870 = vmatmul.msk.bf16.vlgmr.msra.gmra.mxu2 %vm1269_vm11, %v1230_v49  ;;  %v681_v49 = vrot.slane %v2463_v59, 1  ;;  %v609_v51 = vshll.u32 %v2512_v45, 16  ;;  %v705_v53 = vrot.slane %v2512_v45, 1 }
  0xb8   : > { %852 = vrot.lane.b32.xlu0 %v2368_v43, %s2080_s29 }
  0xb9   : > { %638 = vrot.lane.b32.xlu1 %v2346_v29, %s2082_s6  ;;  %936 = vrot.lane.b32.xlu2 %v2449_v56, %s2083_s7  ;;  %v427_v29 = vpack.c.b16 %v411_v4, %v411_v4 }
  0xba   : > { %v751_v58 = vpop.permute.xlu0 %750 }
  0xbb   : > { %v730_v1 = vpop.permute.xlu1 %729  ;;  %v886_v62 = vpop.permute.xlu2 %885  ;;  %v518_v16 = vshll.u32 %v427_v29, 16  ;;  %v1051_v21 = vsel %vm1047_vm6, %v1018_v12, %v751_v58  ;;  %v682_v46 = vrot.slane %v427_v29, 1  ;;  %v611_v29 = vrot.slane %v609_v51, 1 }
  0xbc   : > { %v1084_v0 = vsel %vm1080_vm5, %v1051_v21, %v798_v52 }
  0xbd   : > { %v520_v24 = vrot.slane %v518_v16, 1 }
  0xbf   : > { %v2493_v32 = vsel %vm437_vm1, %v516_v27, %v520_v24 }
  0xc0   : > { %971 = vrot.lane.b32.xlu0 %v2460_v3, %s2084_s8 }
  0xc1   : > { %803 = vrot.lane.b32.xlu1 %v2431_v22, %s2081_s30  ;;  %719 = vrot.lane.b32.xlu2 %v2342_v23, %s2078_s27 }
  0xc2   : > { %v833_v6 = vpop.permute.xlu0 %832 }
  0xc3   : > { %v917_v10 = vpop.permute.xlu1 %916  ;;  %v2474_v11 = vpop.permute.xlu2 %634  ;;  %v1117_v28 = vsel %vm1113_vm7, %v1084_v0, %v833_v6  ;;  %v607_v6 = vshrl.u32 %v2512_v45, 16 }
  0xc4   : > { %v1150_v31 = vsel %vm1146_vm8, %v1117_v28, %v870_v34 }
  0xc5   : > { %v1183_v37 = vsel %vm1179_vm9, %v1150_v31, %v917_v10  ;;  %v612_v10 = vor.u32 %v611_v29, %v607_v6 }
  0xc8   : > { %756 = vrot.lane.b32.xlu0 %v2393_v57, %s2077_s26 }
  0xc9   : > { %735 = vrot.lane.b32.xlu1 %v2368_v43, %s2078_s27  ;;  %654 = vrot.lane.b32.xlu2 %v2358_v35, %s2082_s6  ;;  %v1034_v35 = vsel %vm1014_vm4, %v1001_v50, %v730_v1  ;;  %v299_v43 = vld [vmem:[%s2139_s25 + $0xb0] sm:$0x1]  ;;  %v278_v50 = vld [vmem:[%s2139_s25 + $0x5c] sm:$0x1] }
  0xca   : > { %v767_v23 = vpop.permute.xlu0 %766  ;;  %v419_v8 = vunpack.c.l.b16 %v299_v43  ;;  %v412_v31 = vunpack.c.l.b16 %v278_v50 }
  0xcb   : > { %v849_v25 = vpop.permute.xlu1 %848  ;;  %v800_v30 = vpop.permute.xlu2 %799  ;;  %v1067_v33 = vsel %vm1047_vm6, %v1034_v35, %v767_v23  ;;  %v987_v23 = vsel %vm981_vm3, %v2160_v17, %v2474_v11  ;;  %v2559_v11 = vld [vmem:[%s2139_s25 + $0x54] sm:$0xff] }
  0xcc   : > { %v1100_v34 = vsel %vm1080_vm5, %v1067_v33, %v814_v54  ;;  %v435_v48 = vpack.c.b16 %v419_v8, %v419_v8  ;;  %v302_v33 = vld [vmem:[%s2139_s25 + $0xbc] sm:$0x1]  ;;  %v428_v8 = vpack.c.b16 %v412_v31, %v412_v31 }
  0xcd   : > { %v1133_v44 = vsel %vm1113_vm7, %v1100_v34, %v849_v25  ;;  %v420_v34 = vunpack.c.l.b16 %v302_v33 }
  0xce   : > { %v1166_v52 = vsel %vm1146_vm8, %v1133_v44, %v886_v62  ;;  %v706_v58 = vrot.slane %v435_v48, 1  ;;  %v2528_v62 = vsel %vm662_vm0, %v681_v49, %v682_v46  ;;  %v614_v7 = vshll.u32 %v435_v48, 16 }
  0xcf   : > { %v523_v44 = vshrl.u32 %v2559_v11, 16  ;;  %v530_v49 = vshll.u32 %v428_v8, 16 }
  0xd0   : > { %838 = vrot.lane.b32.xlu0 %v2434_v38, %s2080_s29  ;;  %v2532_v9 = vsel %vm662_vm0, %v705_v53, %v706_v58  ;;  %v616_v12 = vrot.slane %v614_v7, 1 }
  0xd1   : > { %922 = vrot.lane.b32.xlu1 %v2493_v32, %s2083_s7  ;;  %875 = vrot.lane.b32.xlu2 %v2463_v59, %s2079_s28 }
  0xd2   : > { %v952_v40 = vpop.permute.xlu0 %951  ;;  %v2541_v21 = vsel %vm437_vm1, %v612_v10, %v616_v12 }
  0xd3   : > { %v1216_v19 = vsel %vm1212_vm10, %v1183_v37, %v952_v40  ;;  %v968_v41 = vpop.permute.xlu1 %967  ;;  %v2508_v42 = vpop.permute.xlu2 %731 }
  0xd4   : > { %1863 = vmatmul.msk.bf16.gmra.mxu0 %vm1269_vm11, %v1216_v19 }
  0xd8   : > { %772 = vrot.lane.b32.xlu0 %v2418_v18, %s2077_s26 }
  0xd9   : > { %854 = vrot.lane.b32.xlu1 %v2460_v3, %s2080_s29  ;;  %819 = vrot.lane.b32.xlu2 %v2449_v56, %s2081_s30 }
  0xda   : > { %v933_v54 = vpop.permute.xlu0 %932 }
  0xdb   : > { %v1199_v47 = vsel %vm1179_vm9, %v1166_v52, %v933_v54  ;;  %v753_v1 = vpop.permute.xlu1 %752  ;;  %v919_v4 = vpop.permute.xlu2 %918  ;;  %v684_v52 = vrot.slane %v2559_v11, 1  ;;  %v685_v54 = vrot.slane %v428_v8, 1 }
  0xdc   : > { %v1232_v63 = vsel %vm1212_vm10, %v1199_v47, %v968_v41  ;;  %v2575_v41 = vld [vmem:[%s2139_s25 + $0xb4] sm:$0xff]  ;;  %v436_v47 = vpack.c.b16 %v420_v34, %v420_v34 }
  0xdd   : > { %1871 = vmatmul.msk.bf16.gmra.mxu2 %vm1269_vm11, %v1232_v63  ;;  %v621_v58 = vshll.u32 %v2575_v41, 16  ;;  %v2592_v6 = vsel %vm662_vm0, %v684_v52, %v685_v54  ;;  %v619_v29 = vshrl.u32 %v2575_v41, 16  ;;  %v708_v31 = vrot.slane %v2575_v41, 1 }
  0xdf   : > { %v623_v10 = vrot.slane %v621_v58, 1 }
  0xe0   : > { %957 = vrot.lane.b32.xlu0 %v2528_v62, %s2084_s8 }
  0xe1   : > { %973 = vrot.lane.b32.xlu1 %v2532_v9, %s2084_s8  ;;  %891 = vrot.lane.b32.xlu2 %v2512_v45, %s2079_s28 }
  0xe2   : > { %v716_v14 = vpop.permute.xlu0 %715 }
  0xe3   : > { %v835_v15 = vpop.permute.xlu1 %834  ;;  %v851_v16 = vpop.permute.xlu2 %850  ;;  %v1020_v0 = vsel %vm1014_vm4, %v987_v23, %v716_v14  ;;  %v624_v23 = vor.u32 %v623_v10, %v619_v29 }
  0xe4   : > { %v1053_v24 = vsel %vm1047_vm6, %v1020_v0, %v753_v1  ;;  %v532_v1 = vrot.slane %v530_v49, 1 }
  0xe5   : > { %v1086_v17 = vsel %vm1080_vm5, %v1053_v24, %v800_v30  ;;  %v525_v30 = vshll.u32 %v2559_v11, 16 }
  0xe6   : > { %v1119_v35 = vsel %vm1113_vm7, %v1086_v17, %v835_v15 }
  0xe7   : > { %v527_v48 = vrot.slane %v525_v30, 1 }
  0xe8   : > { %938 = vrot.lane.b32.xlu0 %v2541_v21, %s2083_s7 }
  0xe9   : > { %758 = vrot.lane.b32.xlu1 %v2463_v59, %s2077_s26  ;;  %640 = vrot.lane.b32.xlu2 %v2431_v22, %s2082_s6 }
  0xea   : > { %v651_v27 = vpop.permute.xlu0 %650 }
  0xeb   : > { %v769_v28 = vpop.permute.xlu1 %768  ;;  %v970_v25 = vpop.permute.xlu2 %969  ;;  %v1003_v46 = vsel %vm981_vm3, %v2207_v2, %v651_v27  ;;  %v528_v2 = vor.u32 %v527_v48, %v523_v44 }
  0xec   : > { %v1036_v53 = vsel %vm1014_vm4, %v1003_v46, %v2508_v42 }
  0xed   : > { %v2597_v12 = vsel %vm437_vm1, %v528_v2, %v532_v1  ;;  %v305_v2 = vld [vmem:[%s2139_s25 + $0xc8] sm:$0x1] }
  0xf0   : > { %721 = vrot.lane.b32.xlu0 %v2434_v38, %s2078_s27 }
  0xf1   : > { %840 = vrot.lane.b32.xlu1 %v2528_v62, %s2080_s29  ;;  %805 = vrot.lane.b32.xlu2 %v2493_v32, %s2081_s30 }
  0xf2   : > { %v872_v43 = vpop.permute.xlu0 %871 }
  0xf3   : > { %v1152_v22 = vsel %vm1146_vm8, %v1119_v35, %v872_v43  ;;  %v954_v37 = vpop.permute.xlu1 %953  ;;  %v2570_v40 = vpop.permute.xlu2 %754  ;;  %v709_v35 = vrot.slane %v436_v47, 1 }
  0xf4   : > { %v1185_v38 = vsel %vm1179_vm9, %v1152_v22, %v919_v4  ;;  %v1069_v4 = vsel %vm1047_vm6, %v1036_v53, %v769_v28  ;;  %v1475_v22 = vld [vmem:[%s2947_s3] sm:$0xf] }
  0xf5   : > { %v1218_v19 = vsel %vm1212_vm10, %v1185_v38, %v954_v37  ;;  %v2624_v33 = vsel %vm662_vm0, %v708_v31, %v709_v35  ;;  %v1530_v30 = vsel %vm1528_vm12, %v1475_v22, 0 }
  0xf6   : > { %1864 = vmatmul.msk.bf16.gmra.mxu0 %vm1269_vm11, %v1218_v19  ;;  %1539 = vmatpush.bf16.msra.mxu1 %v1530_v30 }
  0xf7   : > { %2015 = vmatpush.bf16.msra.mxu3 %v1530_v30 }
  0xf8   : > { %656 = vrot.lane.b32.xlu0 %v2449_v56, %s2082_s6 }
  0xf9   : > { %774 = vrot.lane.b32.xlu1 %v2512_v45, %s2077_s26  ;;  %737 = vrot.lane.b32.xlu2 %v2460_v3, %s2078_s27  ;;  %v626_v3 = vshll.u32 %v436_v47, 16 }
  0xfa   : > { %v816_v51 = vpop.permute.xlu0 %815 }
  0xfb   : > { %v935_v63 = vpop.permute.xlu1 %934  ;;  %v837_v56 = vpop.permute.xlu2 %836  ;;  %v1102_v7 = vsel %vm1080_vm5, %v1069_v4, %v816_v51  ;;  %v628_v0 = vrot.slane %v626_v3, 1 }
  0xfc   : > { %v1135_v42 = vsel %vm1113_vm7, %v1102_v7, %v851_v16 }
  0xfd   : > { %v2611_v16 = vsel %vm437_vm1, %v624_v23, %v628_v0 }
 0x100   : > { %877 = vrot.lane.b32.xlu0 %v2559_v11, %s2079_s28 }
 0x101   : > { %959 = vrot.lane.b32.xlu1 %v2592_v6, %s2084_s8  ;;  %924 = vrot.lane.b32.xlu2 %v2597_v12, %s2083_s7 }
 0x102   : > { %v888_v14 = vpop.permute.xlu0 %887 }
 0x103   : > { %v1168_v15 = vsel %vm1146_vm8, %v1135_v42, %v888_v14  ;;  %v718_v27 = vpop.permute.xlu1 %717  ;;  %v771_v28 = vpop.permute.xlu2 %770 }
 0x104   : > { %v1201_v24 = vsel %vm1179_vm9, %v1168_v15, %v935_v63 }
 0x105   : > { %v1234_v50 = vsel %vm1212_vm10, %v1201_v24, %v970_v25 }
 0x106   : > { %1872 = vmatmul.msk.bf16.gmra.mxu2 %vm1269_vm11, %v1234_v50 }
 0x108   : > { %821 = vrot.lane.b32.xlu0 %v2541_v21, %s2081_s30 }
 0x109   : > { %940 = vrot.lane.b32.xlu1 %v2611_v16, %s2083_s7  ;;  %856 = vrot.lane.b32.xlu2 %v2532_v9, %s2080_s29 }
 0x10a   : > { %v637_v17 = vpop.permute.xlu0 %636 }
 0x10b   : > { %v653_v43 = vpop.permute.xlu1 %652  ;;  %v956_v25 = vpop.permute.xlu2 %955  ;;  %v989_v8 = vsel %vm981_vm3, %v2247_v26, %v637_v17 }
 0x10c   : > { %v1022_v34 = vsel %vm1014_vm4, %v989_v8, %v718_v27  ;;  %v1005_v54 = vsel %vm981_vm3, %v2274_v39, %v653_v43  ;;  %v781_v39 = vunpack.c.l.b16 %v305_v2 }
 0x10e   : > { %v782_v0 = vpack.c.b16 %v781_v39, %v781_v39 }
 0x110   : > { %893 = vrot.lane.b32.xlu0 %v2575_v41, %s2079_s28  ;;  %v791_v31 = vshll.u32 %v782_v0, 16 }
 0x111   : > { %723 = vrot.lane.b32.xlu1 %v2528_v62, %s2078_s27  ;;  %975 = vrot.lane.b32.xlu2 %v2624_v33, %s2084_s8  ;;  %v1055_v62 = vsel %vm1047_vm6, %v1022_v34, %v2570_v40  ;;  %v2657_v40 = vld [vmem:[%s2946_s2] ss:$0 sm:$0xff] }
 0x112   : > { %v802_v37 = vpop.permute.xlu0 %801 }
 0x113   : > { %v874_v38 = vpop.permute.xlu1 %873  ;;  %v937_v19 = vpop.permute.xlu2 %936  ;;  %v1088_v48 = vsel %vm1080_vm5, %v1055_v62, %v802_v37  ;;  %v793_v37 = vrot.slane %v791_v31, 1  ;;  %v828_v62 = vrot.slane %v782_v0, 1  ;;  %v2052_v0 = vld [vmem:[%s2139_s25 + $0x6c] sm:$0xff] }
 0x114   : > { %v1121_v26 = vsel %vm1113_vm7, %v1088_v48, %v837_v56  ;;  %v2673_v56 = vld [vmem:[%s2139_s25 + $0xc0] sm:$0xff] }
 0x115   : > { %v786_v7 = vshll.u32 %v2673_v56, 16  ;;  %v784_v27 = vshrl.u32 %v2673_v56, 16 }
 0x117   : > { %v788_v24 = vrot.slane %v786_v7, 1  ;;  %v2051_v7 = vld [vmem:[%s2139_s25 + $0x60] sm:$0xff] }
 0x118   : > { %642 = vrot.lane.b32.xlu0 %v2493_v32, %s2082_s6  ;;  %v1154_v32 = vsel %vm1146_vm8, %v1121_v26, %v874_v38 }
 0x119   : > { %658 = vrot.lane.b32.xlu1 %v2541_v21, %s2082_s6  ;;  %760 = vrot.lane.b32.xlu2 %v2559_v11, %s2077_s26  ;;  %v789_v30 = vor.u32 %v788_v24, %v784_v27  ;;  %v1914_v24 = vld [vmem:[%s2139_s25 + $0xcc] sm:$0xff] }
 0x11a   : > { %v734_v44 = vpop.permute.xlu0 %733 }
 0x11b   : > { %v818_v49 = vpop.permute.xlu1 %817  ;;  %v2644_v46 = vpop.permute.xlu2 %719 }
 0x120   : > { %807 = vrot.lane.b32.xlu0 %v2597_v12, %s2081_s30 }
 0x121   : > { %879 = vrot.lane.b32.xlu1 %v2156_v13, %s2079_s28  ;;  %842 = vrot.lane.b32.xlu2 %v2592_v6, %s2080_s29  ;;  %v1038_v13 = vsel %vm1014_vm4, %v1005_v54, %v734_v44  ;;  %v2696_v44 = vsel %vm437_vm1, %v789_v30, %v793_v37 }
 0x122   : > { %v1315_v21 = vpop.f32.mrf.mxu0  ;;  %v921_v51 = vpop.permute.xlu0 %920  ;;  %v1071_v63 = vsel %vm1047_vm6, %v1038_v13, %v771_v28 }
 0x123   : > { %v1187_v52 = vsel %vm1179_vm9, %v1154_v32, %v921_v51  ;;  %v890_v47 = vpop.permute.xlu1 %889  ;;  %v2663_v58 = vpop.permute.xlu2 %654  ;;  %v1316_v1 = vadd.f32 %v2657_v40, %v1315_v21  ;;  %v1104_v10 = vsel %vm1080_vm5, %v1071_v63, %v818_v49 }
 0x124   : > { %v1220_v53 = vsel %vm1212_vm10, %v1187_v52, %v956_v25 }
 0x125   : > { %1865 = vmatmul.msk.bf16.gmra.mxu0 %vm1269_vm11, %v1220_v53  ;;  %v1395_v3 = vmul.f32 0.1, %v1316_v1 }
 0x127   : > { %v1427_v28 = vmax.f32 %v1316_v1, %v1395_v3  ;;  %v1007_v3 = vsel %vm981_vm3, %v2325_v5, %v2663_v58  ;;  %v308_v5 = vld [vmem:[%s2139_s25 + $0xd4] sm:$0x1]  ;;  %s1896_s25 = sshll.u32 %s2955_s18, 7 }
 0x128   : > { %739 = vrot.lane.b32.xlu0 %v2532_v9, %s2078_s27 }
 0x129   : > { %823 = vrot.lane.b32.xlu1 %v2611_v16, %s2081_s30  ;;  %776 = vrot.lane.b32.xlu2 %v2575_v41, %s2077_s26 }
 0x12a   : > { %v1317_v4 = vpop.f32.mrf.mxu0  ;;  %v853_v29 = vpop.permute.xlu0 %852 }
 0x12b   : > { %v1318_v42 = vadd.f32 %v2657_v40, %v1317_v4  ;;  %v1137_v9 = vsel %vm1113_vm7, %v1104_v10, %v853_v29  ;;  %v639_v14 = vpop.permute.xlu1 %638  ;;  %v876_v15 = vpop.permute.xlu2 %875 }
 0x12c   : > { %v1170_v17 = vsel %vm1146_vm8, %v1137_v9, %v890_v47 }
 0x12d   : > { %v1396_v23 = vmul.f32 0.1, %v1318_v42  ;;  %v1203_v25 = vsel %vm1179_vm9, %v1170_v17, %v937_v19  ;;  %v827_v19 = vrot.slane %v2673_v56, 1 }
 0x12f   : > { %v1428_v50 = vmax.f32 %v1318_v42, %v1396_v23  ;;  %v829_v21 = vsel %vm662_vm0, %v827_v19, %v828_v62  ;;  %v903_v62 = vshrl.u32 %v1914_v24, 16 }
 0x130   : > { %926 = vrot.lane.b32.xlu0 %v2203_v61, %s2083_s7 }
 0x131   : > { %v1459_v35 = vpack.c.bf16 %v1428_v50, %v1427_v28  ;;  %895 = vrot.lane.b32.xlu1 %v2673_v56, %s2079_s28  ;;  %961 = vrot.lane.b32.xlu2 %v2184_v36, %s2084_s8  ;;  %v900_v28 = vunpack.c.l.b16 %v308_v5 }
 0x132   : > { %v972_v43 = vpop.permute.xlu0 %971 }
 0x133   : > { %1878 = vmatmul.msk.bf16.vlgmr.msra.gmra.mxu1 %vm1014_vm4, %v1459_v35  ;;  %v1236_v22 = vsel %vm1212_vm10, %v1203_v25, %v972_v43  ;;  %v804_v38 = vpop.permute.xlu1 %803  ;;  %v820_v8 = vpop.permute.xlu2 %819  ;;  %v901_v31 = vpack.c.b16 %v900_v28, %v900_v28  ;;  %v905_v35 = vshll.u32 %v1914_v24, 16 }
 0x134   : > { %1873 = vmatmul.msk.bf16.gmra.mxu2 %vm1269_vm11, %v1236_v22 }
 0x137   : > { %v1355_v34 = vpop.f32.mrf.mxu2 }
 0x138   : > { %858 = vrot.lane.b32.xlu0 %v2624_v33, %s2080_s29  ;;  %v1356_v49 = vadd.f32 %v2657_v40, %v1355_v34 }
 0x139   : > { %644 = vrot.lane.b32.xlu1 %v2597_v12, %s2082_s6  ;;  %942 = vrot.lane.b32.xlu2 %v2696_v44, %s2083_s7  ;;  %v991_v12 = vsel %vm981_vm3, %v2311_v55, %v639_v14 }
 0x13a   : > { %v757_v48 = vpop.permute.xlu0 %756  ;;  %v1411_v52 = vmul.f32 0.1, %v1356_v49  ;;  %v1024_v4 = vsel %vm1014_vm4, %v991_v12, %v2644_v46 }
 0x13b   : > { %v736_v26 = vpop.permute.xlu1 %735  ;;  %v892_v32 = vpop.permute.xlu2 %891  ;;  %v1057_v29 = vsel %vm1047_vm6, %v1024_v4, %v757_v48  ;;  %v907_v48 = vrot.slane %v905_v35, 1 }
 0x13c   : > { %v1443_v13 = vmax.f32 %v1356_v49, %v1411_v52  ;;  %v1090_v55 = vsel %vm1080_vm5, %v1057_v29, %v804_v38  ;;  %v946_v38 = vrot.slane %v1914_v24, 1  ;;  %v910_v49 = vshll.u32 %v901_v31, 16 }
 0x13f   : > { %v1357_v51 = vpop.f32.mrf.mxu2 }
 0x140   : > { %v1358_v54 = vadd.f32 %v2657_v40, %v1357_v51  ;;  %977 = vrot.lane.b32.xlu0 %v829_v21, %s2084_s8 }
 0x141   : > { %809 = vrot.lane.b32.xlu1 %v2203_v61, %s2081_s30  ;;  %725 = vrot.lane.b32.xlu2 %v2592_v6, %s2078_s27 }
 0x142   : > { %v1412_v47 = vmul.f32 0.1, %v1358_v54  ;;  %v839_v53 = vpop.permute.xlu0 %838 }
 0x143   : > { %v923_v1 = vpop.permute.xlu1 %922  ;;  %v2715_v63 = vpop.permute.xlu2 %640  ;;  %v1123_v6 = vsel %vm1113_vm7, %v1090_v55, %v839_v53 }
 0x144   : > { %v1444_v2 = vmax.f32 %v1358_v54, %v1412_v47  ;;  %v1156_v42 = vsel %vm1146_vm8, %v1123_v6, %v876_v15  ;;  %v908_v54 = vor.u32 %v907_v48, %v903_v62  ;;  %v912_v47 = vrot.slane %v910_v49, 1 }
 0x145   : > { %v1189_v14 = vsel %vm1179_vm9, %v1156_v42, %v923_v1 }
 0x146   : > { %v2717_v39 = vpack.c.bf16 %v1444_v2, %v1443_v13  ;;  %v913_v2 = vsel %vm437_vm1, %v908_v54, %v912_v47 }
 0x148   : > { %762 = vrot.lane.b32.xlu0 %v2051_v7, %s2077_s26 }
 0x149   : > { %741 = vrot.lane.b32.xlu1 %v2624_v33, %s2078_s27  ;;  %660 = vrot.lane.b32.xlu2 %v2611_v16, %s2082_s6  ;;  %v1040_v33 = vsel %vm1014_vm4, %v1007_v3, %v736_v26 }
 0x14a   : > { %v773_v61 = vpop.permute.xlu0 %772 }
 0x14b   : > { %v855_v10 = vpop.permute.xlu1 %854  ;;  %v2730_v46 = vpop.permute.xlu2 %805  ;;  %v1073_v16 = vsel %vm1047_vm6, %v1040_v33, %v773_v61 }
 0x14c   : > { %v1106_v15 = vsel %vm1080_vm5, %v1073_v16, %v820_v8  ;;  %v947_v8 = vrot.slane %v901_v31, 1 }
 0x14d   : > { %v1139_v17 = vsel %vm1113_vm7, %v1106_v15, %v855_v10 }
 0x14e   : > { %v1172_v43 = vsel %vm1146_vm8, %v1139_v17, %v892_v32 }
 0x150   : > { %844 = vrot.lane.b32.xlu0 %v2184_v36, %s2080_s29 }
 0x151   : > { %v1320_v9 = vpop.f32.mrf.mxu0  ;;  %928 = vrot.lane.b32.xlu1 %v2200_v60, %s2083_s7  ;;  %881 = vrot.lane.b32.xlu2 %v2052_v0, %s2079_s28 }
 0x152   : > { %v958_v23 = vpop.permute.xlu0 %957  ;;  %v1321_v50 = vadd.f32 %v2657_v40, %v1320_v9 }
 0x153   : > { %v1222_v58 = vsel %vm1212_vm10, %v1189_v14, %v958_v23  ;;  %v974_v36 = vpop.permute.xlu1 %973  ;;  %v2749_v27 = vpop.permute.xlu2 %737 }
 0x154   : > { %1866 = vmatmul.msk.bf16.gmra.mxu0 %vm1269_vm11, %v1222_v58  ;;  %v1397_v25 = vmul.f32 0.1, %v1321_v50 }
 0x156   : > { %v1429_v26 = vmax.f32 %v1321_v50, %v1397_v25 }
 0x158   : > { %778 = vrot.lane.b32.xlu0 %v2673_v56, %s2077_s26 }
 0x159   : > { %v1322_v60 = vpop.f32.mrf.mxu0  ;;  %860 = vrot.lane.b32.xlu1 %v829_v21, %s2080_s29  ;;  %825 = vrot.lane.b32.xlu2 %v2696_v44, %s2081_s30  ;;  %v948_v21 = vsel %vm662_vm0, %v946_v38, %v947_v8 }
 0x15a   : > { %v1323_v22 = vadd.f32 %v2657_v40, %v1322_v60  ;;  %v939_v30 = vpop.permute.xlu0 %938 }
 0x15b   : > { %v1205_v37 = vsel %vm1179_vm9, %v1172_v43, %v939_v30  ;;  %v759_v56 = vpop.permute.xlu1 %758  ;;  %v925_v51 = vpop.permute.xlu2 %924 }
 0x15c   : > { %v1398_v34 = vmul.f32 0.1, %v1323_v22  ;;  %v1238_v19 = vsel %vm1212_vm10, %v1205_v37, %v974_v36 }
 0x15d   : > { %1874 = vmatmul.msk.bf16.gmra.mxu2 %vm1269_vm11, %v1238_v19 }
 0x15e   : > { %v1430_v32 = vmax.f32 %v1323_v22, %v1398_v34 }
 0x160   : > { %963 = vrot.lane.b32.xlu0 %v2231_v20, %s2084_s8  ;;  %v1360_v44 = vpop.f32.mrf.mxu2  ;;  %v1460_v52 = vpack.c.bf16 %v1430_v32, %v1429_v26  ;;  %v993_v20 = vsel %vm981_vm3, %v2393_v57, %v2715_v63 }
 0x161   : > { %979 = vrot.lane.b32.xlu1 %v948_v21, %s2084_s8  ;;  %897 = vrot.lane.b32.xlu2 %v1914_v24, %s2079_s28  ;;  %v1361_v13 = vadd.f32 %v2657_v40, %v1360_v44  ;;  %s2838_s28 = scalar_lea.vmem %s2949_s5, %s1896_s25 }
 0x162   : > { %1879 = vmatmul.msk.bf16.gmra.mxu1 %vm1014_vm4, %v1460_v52  ;;  %v722_v53 = vpop.permute.xlu0 %721 }
 0x163   : > { %v841_v12 = vpop.permute.xlu1 %840  ;;  %v1413_v4 = vmul.f32 0.1, %v1361_v13  ;;  %v1026_v29 = vsel %vm1014_vm4, %v993_v20, %v722_v53  ;;  %v857_v61 = vpop.permute.xlu2 %856 }
 0x164   : > { %v1059_v10 = vsel %vm1047_vm6, %v1026_v29, %v759_v56 }
 0x165   : > { %v1445_v42 = vmax.f32 %v1361_v13, %v1413_v4  ;;  %v1092_v16 = vsel %vm1080_vm5, %v1059_v10, %v2730_v46 }
 0x166   : > { %v1125_v63 = vsel %vm1113_vm7, %v1092_v16, %v841_v12 }
 0x168   : > { %944 = vrot.lane.b32.xlu0 %v913_v2, %s2083_s7  ;;  %v1362_v1 = vpop.f32.mrf.mxu2 }
 0x169   : > { %v1363_v7 = vadd.f32 %v2657_v40, %v1362_v1 }
 0x16a   : > { %v657_v55 = vpop.permute.xlu0 %656 }
 0x16b   : > { %v1414_v6 = vmul.f32 0.1, %v1363_v7  ;;  %v775_v3 = vpop.permute.xlu1 %774  ;;  %v976_v0 = vpop.permute.xlu2 %975  ;;  %v1009_v46 = vsel %vm981_vm3, %v2418_v18, %v657_v55 }
 0x16c   : > { %v1042_v28 = vsel %vm1014_vm4, %v1009_v46, %v2749_v27 }
 0x16d   : > { %v1446_v33 = vmax.f32 %v1363_v7, %v1414_v6  ;;  %v1075_v43 = vsel %vm1047_vm6, %v1042_v28, %v775_v3 }
 0x16f   : > { %v1468_v57 = vpack.c.bf16 %v1446_v33, %v1445_v42 }
 0x171   : > { %1887 = vmatmul.msk.bf16.vlgmr.msra.gmra.mxu3 %vm1014_vm4, %v1468_v57 }
 0x172   : > { %v878_v9 = vpop.permute.xlu0 %877 }
 0x173   : > { %v1158_v14 = vsel %vm1146_vm8, %v1125_v63, %v878_v9  ;;  %v1325_v23 = vpop.f32.mrf.mxu0  ;;  %v960_v5 = vpop.permute.xlu1 %959 }
 0x174   : > { %v1191_v58 = vsel %vm1179_vm9, %v1158_v14, %v925_v51  ;;  %v1326_v36 = vadd.f32 %v2657_v40, %v1325_v23  ;;  %v761_v35 = vpop.permute.xlu2 %760 }
 0x175   : > { %v1224_v15 = vsel %vm1212_vm10, %v1191_v58, %v960_v5 }
 0x176   : > { %1867 = vmatmul.msk.bf16.gmra.mxu0 %vm1269_vm11, %v1224_v15  ;;  %v1399_v17 = vmul.f32 0.1, %v1326_v36 }
 0x178   : > { %v1431_v30 = vmax.f32 %v1326_v36, %v1399_v17 }
 0x17a   : > { %v822_v24 = vpop.permute.xlu0 %821 }
 0x17b   : > { %v1327_v50 = vpop.f32.mrf.mxu0  ;;  %v941_v31 = vpop.permute.xlu1 %940  ;;  %v1108_v22 = vsel %vm1080_vm5, %v1075_v43, %v822_v24 }
 0x17c   : > { %v1328_v60 = vadd.f32 %v2657_v40, %v1327_v50  ;;  %v1141_v18 = vsel %vm1113_vm7, %v1108_v22, %v857_v61  ;;  %v843_v62 = vpop.permute.xlu2 %842 }
 0x17e   : > { %v1400_v25 = vmul.f32 0.1, %v1328_v60 }
 0x180   : > { %v1432_v37 = vmax.f32 %v1328_v60, %v1400_v25 }
 0x182   : > { %v894_v38 = vpop.permute.xlu0 %893  ;;  %v1461_v8 = vpack.c.bf16 %v1432_v37, %v1431_v30  ;;  %v2830_v37 = vld [vmem:[%s2948_s4] ss:$0 sm:$0xff] }
 0x183   : > { %v1174_v34 = vsel %vm1146_vm8, %v1141_v18, %v894_v38  ;;  %v724_v27 = vpop.permute.xlu1 %723 }
 0x184   : > { %1880 = vmatmul.msk.bf16.gmra.mxu1 %vm1014_vm4, %v1461_v8  ;;  %v1207_v56 = vsel %vm1179_vm9, %v1174_v34, %v941_v31  ;;  %v777_v51 = vpop.permute.xlu2 %776 }
 0x185   : > { %v1240_v19 = vsel %vm1212_vm10, %v1207_v56, %v976_v0 }
 0x186   : > { %1875 = vmatmul.msk.bf16.gmra.mxu2 %vm1269_vm11, %v1240_v19 }
 0x189   : > { %v1365_v48 = vpop.f32.mrf.mxu2 }
 0x18a   : > { %v643_v49 = vpop.permute.xlu0 %642  ;;  %v1366_v32 = vadd.f32 %v2657_v40, %v1365_v48 }
 0x18b   : > { %v659_v26 = vpop.permute.xlu1 %658  ;;  %v995_v12 = vsel %vm981_vm3, %v2463_v59, %v643_v49 }
 0x18c   : > { %v1415_v44 = vmul.f32 0.1, %v1366_v32  ;;  %v1028_v20 = vsel %vm1014_vm4, %v995_v12, %v724_v27  ;;  %v962_v7 = vpop.permute.xlu2 %961  ;;  %v1011_v33 = vsel %vm981_vm3, %v2512_v45, %v659_v26 }
 0x18d   : > { %v1061_v29 = vsel %vm1047_vm6, %v1028_v20, %v761_v35 }
 0x18e   : > { %v1447_v13 = vmax.f32 %v1366_v32, %v1415_v44 }
 0x191   : > { %v1367_v21 = vpop.f32.mrf.mxu2 }
 0x192   : > { %v1368_v52 = vadd.f32 %v2657_v40, %v1367_v21  ;;  %v808_v54 = vpop.permute.xlu0 %807 }
 0x193   : > { %v880_v53 = vpop.permute.xlu1 %879  ;;  %v1094_v61 = vsel %vm1080_vm5, %v1061_v29, %v808_v54 }
 0x194   : > { %v1416_v47 = vmul.f32 0.1, %v1368_v52  ;;  %v1127_v6 = vsel %vm1113_vm7, %v1094_v61, %v843_v62  ;;  %v943_v9 = vpop.permute.xlu2 %942 }
 0x195   : > { %v1160_v10 = vsel %vm1146_vm8, %v1127_v6, %v880_v53 }
 0x196   : > { %v1448_v2 = vmax.f32 %v1368_v52, %v1416_v47 }
 0x198   : > { %v1469_v1 = vpack.c.bf16 %v1448_v2, %v1447_v13 }
 0x19a   : > { %1888 = vmatmul.msk.bf16.gmra.mxu3 %vm1014_vm4, %v1469_v1  ;;  %v740_v4 = vpop.permute.xlu0 %739 }
 0x19b   : > { %v824_v55 = vpop.permute.xlu1 %823  ;;  %v1044_v63 = vsel %vm1014_vm4, %v1011_v33, %v740_v4 }
 0x19c   : > { %v1077_v23 = vsel %vm1047_vm6, %v1044_v63, %v777_v51  ;;  %v726_v60 = vpop.permute.xlu2 %725 }
 0x19d   : > { %v1110_v58 = vsel %vm1080_vm5, %v1077_v23, %v824_v55 }
 0x1a2   : > { %v1330_v3 = vpop.f32.mrf.mxu0  ;;  %v927_v59 = vpop.permute.xlu0 %926 }
 0x1a3   : > { %v1193_v42 = vsel %vm1179_vm9, %v1160_v10, %v927_v59  ;;  %v896_v16 = vpop.permute.xlu1 %895  ;;  %v1331_v14 = vadd.f32 %v2657_v40, %v1330_v3 }
 0x1a4   : > { %v1226_v57 = vsel %vm1212_vm10, %v1193_v42, %v962_v7  ;;  %v661_v34 = vpop.permute.xlu2 %660 }
 0x1a5   : > { %1868 = vmatmul.msk.bf16.gmra.mxu0 %vm1269_vm11, %v1226_v57  ;;  %v1401_v15 = vmul.f32 0.1, %v1331_v14  ;;  %v1013_v29 = vsel %vm981_vm3, %v2575_v41, %v661_v34 }
 0x1a7   : > { %v1433_v28 = vmax.f32 %v1331_v14, %v1401_v15 }
 0x1aa   : > { %v1332_v0 = vpop.f32.mrf.mxu0  ;;  %v859_v5 = vpop.permute.xlu0 %858 }
 0x1ab   : > { %v1333_v46 = vadd.f32 %v2657_v40, %v1332_v0  ;;  %v1143_v45 = vsel %vm1113_vm7, %v1110_v58, %v859_v5  ;;  %v645_v36 = vpop.permute.xlu1 %644 }
 0x1ac   : > { %v1176_v17 = vsel %vm1146_vm8, %v1143_v45, %v896_v16  ;;  %v882_v44 = vpop.permute.xlu2 %881  ;;  %v997_v52 = vsel %vm981_vm3, %v2559_v11, %v645_v36 }
 0x1ad   : > { %v1402_v24 = vmul.f32 0.1, %v1333_v46  ;;  %v1209_v25 = vsel %vm1179_vm9, %v1176_v17, %v943_v9  ;;  %v1030_v12 = vsel %vm1014_vm4, %v997_v52, %v726_v60 }
 0x1af   : > { %v1434_v50 = vmax.f32 %v1333_v46, %v1402_v24 }
 0x1b0   : > { %v1541_v31 = vpop.f32.mrf.mxu1 }
 0x1b1   : > { %v1462_v35 = vpack.c.bf16 %v1434_v50, %v1433_v28  ;;  %v1542_v8 = vadd.f32 %v2830_v37, %v1541_v31 }
 0x1b2   : > { %v978_v43 = vpop.permute.xlu0 %977 }
 0x1b3   : > { %1881 = vmatmul.msk.bf16.gmra.mxu1 %vm1014_vm4, %v1462_v35  ;;  %v1242_v22 = vsel %vm1212_vm10, %v1209_v25, %v978_v43  ;;  %v810_v30 = vpop.permute.xlu1 %809 }
 0x1b4   : > { %1876 = vmatmul.msk.bf16.gmra.mxu2 %vm1269_vm11, %v1242_v22  ;;  %v826_v7 = vpop.permute.xlu2 %825 }
 0x1b7   : > { %v1370_v18 = vpop.f32.mrf.mxu2 }
 0x1b8   : > { %v1543_v38 = vpop.f32.mrf.mxu1  ;;  %v1371_v62 = vadd.f32 %v2657_v40, %v1370_v18 }
 0x1b9   : > { %v1544_v27 = vadd.f32 %v2830_v37, %v1543_v38 }
 0x1ba   : > { %v763_v56 = vpop.permute.xlu0 %762  ;;  %v1417_v26 = vmul.f32 0.1, %v1371_v62 }
 0x1bb   : > { %v1920_v19 = vpack.c.bf16 %v1544_v27, %v1542_v8  ;;  %v742_v48 = vpop.permute.xlu1 %741  ;;  %v1063_v2 = vsel %vm1047_vm6, %v1030_v12, %v763_v56 }
 0x1bc   : > { %v1449_v54 = vmax.f32 %v1371_v62, %v1417_v26  ;;  %v1096_v1 = vsel %vm1080_vm5, %v1063_v2, %v810_v30  ;;  %v1046_v61 = vsel %vm1014_vm4, %v1013_v29, %v742_v48  ;;  %v898_v57 = vpop.permute.xlu2 %897 }
 0x1bd   : > { %1921 = vst [vmem:[%s2838_s28] sm:$0xff] %v1920_v19  }
 0x1bf   : > { %v1372_v49 = vpop.f32.mrf.mxu2 }
 0x1c0   : > { %v1373_v32 = vadd.f32 %v2657_v40, %v1372_v49 }
 0x1c2   : > { %v1418_v21 = vmul.f32 0.1, %v1373_v32  ;;  %v845_v51 = vpop.permute.xlu0 %844 }
 0x1c3   : > { %v929_v13 = vpop.permute.xlu1 %928  ;;  %v1129_v4 = vsel %vm1113_vm7, %v1096_v1, %v845_v51 }
 0x1c4   : > { %v1450_v47 = vmax.f32 %v1373_v32, %v1418_v21  ;;  %v1162_v11 = vsel %vm1146_vm8, %v1129_v4, %v882_v44 }
 0x1c5   : > { %v1195_v3 = vsel %vm1179_vm9, %v1162_v11, %v929_v13 }
 0x1c6   : > { %v1470_v53 = vpack.c.bf16 %v1450_v47, %v1449_v54 }
 0x1c8   : > { %1889 = vmatmul.msk.bf16.gmra.mxu3 %vm1014_vm4, %v1470_v53 }
 0x1ca   : > { %v779_v20 = vpop.permute.xlu0 %778 }
 0x1cb   : > { %v1079_v55 = vsel %vm1047_vm6, %v1046_v61, %v779_v20  ;;  %v861_v6 = vpop.permute.xlu1 %860 }
 0x1cc   : > { %v1112_v33 = vsel %vm1080_vm5, %v1079_v55, %v826_v7 }
 0x1cd   : > { %v1145_v16 = vsel %vm1113_vm7, %v1112_v33, %v861_v6 }
 0x1ce   : > { %v1178_v14 = vsel %vm1146_vm8, %v1145_v16, %v898_v57 }
 0x1d1   : > { %v1335_v10 = vpop.f32.mrf.mxu0 }
 0x1d2   : > { %v964_v59 = vpop.permute.xlu0 %963  ;;  %v1336_v41 = vadd.f32 %v2657_v40, %v1335_v10 }
 0x1d3   : > { %v1228_v42 = vsel %vm1212_vm10, %v1195_v3, %v964_v59  ;;  %v980_v9 = vpop.permute.xlu1 %979 }
 0x1d4   : > { %1869 = vmatmul.msk.bf16.gmra.mxu0 %vm1269_vm11, %v1228_v42  ;;  %v1403_v23 = vmul.f32 0.1, %v1336_v41 }
 0x1d6   : > { %v1435_v45 = vmax.f32 %v1336_v41, %v1403_v23 }
 0x1d9   : > { %v1337_v63 = vpop.f32.mrf.mxu0 }
 0x1da   : > { %v1338_v0 = vadd.f32 %v2657_v40, %v1337_v63  ;;  %v945_v5 = vpop.permute.xlu0 %944 }
 0x1db   : > { %v1211_v58 = vsel %vm1179_vm9, %v1178_v14, %v945_v5 }
 0x1dc   : > { %v1404_v15 = vmul.f32 0.1, %v1338_v0  ;;  %v1244_v46 = vsel %vm1212_vm10, %v1211_v58, %v980_v9 }
 0x1dd   : > { %1877 = vmatmul.msk.bf16.gmra.mxu2 %vm1269_vm11, %v1244_v46 }
 0x1de   : > { %v1436_v36 = vmax.f32 %v1338_v0, %v1404_v15 }
 0x1df   : > { %v1546_v24 = vpop.f32.mrf.mxu1 }
 0x1e0   : > { %v1375_v28 = vpop.f32.mrf.mxu2  ;;  %v1463_v50 = vpack.c.bf16 %v1436_v36, %v1435_v45  ;;  %v1547_v31 = vadd.f32 %v2830_v37, %v1546_v24 }
 0x1e1   : > { %v1376_v17 = vadd.f32 %v2657_v40, %v1375_v28 }
 0x1e2   : > { %1882 = vmatmul.msk.bf16.gmra.mxu1 %vm1014_vm4, %v1463_v50 }
 0x1e3   : > { %v1419_v25 = vmul.f32 0.1, %v1376_v17 }
 0x1e5   : > { %v1451_v38 = vmax.f32 %v1376_v17, %v1419_v25 }
 0x1e7   : > { %v1548_v60 = vpop.f32.mrf.mxu1 }
 0x1e8   : > { %v1549_v35 = vadd.f32 %v2830_v37, %v1548_v60  ;;  %v1377_v43 = vpop.f32.mrf.mxu2 }
 0x1e9   : > { %v1378_v22 = vadd.f32 %v2657_v40, %v1377_v43 }
 0x1ea   : > { %v1925_v30 = vpack.c.bf16 %v1549_v35, %v1547_v31 }
 0x1eb   : > { %v1420_v18 = vmul.f32 0.1, %v1378_v22 }
 0x1ec   : > { %1997 = vst [vmem:[%s2838_s28 + $0x8] sm:$0xff] %v1925_v30  }
 0x1ed   : > { %v1452_v8 = vmax.f32 %v1378_v22, %v1420_v18 }
 0x1ef   : > { %v1471_v34 = vpack.c.bf16 %v1452_v8, %v1451_v38 }
 0x1f1   : > { %1890 = vmatmul.msk.bf16.gmra.mxu3 %vm1014_vm4, %v1471_v34 }
 0x1f3   : > { %v1340_v27 = vpop.f32.mrf.mxu0 }
 0x1f4   : > { %v1586_v56 = vpop.f32.mrf.mxu3  ;;  %v1341_v19 = vadd.f32 %v2657_v40, %v1340_v27 }
 0x1f5   : > { %v1587_v32 = vadd.f32 %v2830_v37, %v1586_v56 }
 0x1f6   : > { %v1405_v48 = vmul.f32 0.1, %v1341_v19 }
 0x1f8   : > { %v1437_v52 = vmax.f32 %v1341_v19, %v1405_v48 }
 0x1fb   : > { %v1342_v62 = vpop.f32.mrf.mxu0 }
 0x1fc   : > { %v1343_v49 = vadd.f32 %v2657_v40, %v1342_v62  ;;  %v1588_v26 = vpop.f32.mrf.mxu3 }
 0x1fd   : > { %v1589_v21 = vadd.f32 %v2830_v37, %v1588_v26 }
 0x1fe   : > { %v1406_v51 = vmul.f32 0.1, %v1343_v49 }
 0x1ff   : > { %v1965_v44 = vpack.c.bf16 %v1589_v21, %v1587_v32 }
 0x200   : > { %v1438_v54 = vmax.f32 %v1343_v49, %v1406_v51 }
 0x201   : > { %2005 = vst [vmem:[%s2838_s28 + $0x48] sm:$0xff] %v1965_v44   ;;  %v1551_v47 = vpop.f32.mrf.mxu1 }
 0x202   : > { %v1464_v53 = vpack.c.bf16 %v1438_v54, %v1437_v52  ;;  %v1552_v2 = vadd.f32 %v2830_v37, %v1551_v47 }
 0x204   : > { %1883 = vmatmul.msk.bf16.gmra.mxu1 %vm1014_vm4, %v1464_v53 }
 0x209   : > { %v1380_v12 = vpop.f32.mrf.mxu2  ;;  %v1553_v13 = vpop.f32.mrf.mxu1 }
 0x20a   : > { %v1554_v20 = vadd.f32 %v2830_v37, %v1553_v13  ;;  %v1381_v4 = vadd.f32 %v2657_v40, %v1380_v12 }
 0x20c   : > { %v1930_v1 = vpack.c.bf16 %v1554_v20, %v1552_v2  ;;  %v1421_v7 = vmul.f32 0.1, %v1381_v4 }
 0x20e   : > { %1998 = vst [vmem:[%s2838_s28 + $0x10] sm:$0xff] %v1930_v1   ;;  %v1453_v55 = vmax.f32 %v1381_v4, %v1421_v7 }
 0x211   : > { %v1382_v29 = vpop.f32.mrf.mxu2 }
 0x212   : > { %v1383_v11 = vadd.f32 %v2657_v40, %v1382_v29 }
 0x214   : > { %v1422_v61 = vmul.f32 0.1, %v1383_v11 }
 0x216   : > { %v1454_v6 = vmax.f32 %v1383_v11, %v1422_v61 }
 0x218   : > { %v1472_v10 = vpack.c.bf16 %v1454_v6, %v1453_v55 }
 0x21a   : > { %1891 = vmatmul.msk.bf16.gmra.mxu3 %vm1014_vm4, %v1472_v10 }
 0x21d   : > { %v1591_v3 = vpop.f32.mrf.mxu3 }
 0x21e   : > { %v1592_v33 = vadd.f32 %v2830_v37, %v1591_v3 }
 0x222   : > { %v1345_v59 = vpop.f32.mrf.mxu0 }
 0x223   : > { %v1346_v16 = vadd.f32 %v2657_v40, %v1345_v59 }
 0x225   : > { %v1593_v42 = vpop.f32.mrf.mxu3  ;;  %v1407_v9 = vmul.f32 0.1, %v1346_v16 }
 0x226   : > { %v1594_v41 = vadd.f32 %v2830_v37, %v1593_v42 }
 0x227   : > { %v1439_v0 = vmax.f32 %v1346_v16, %v1407_v9 }
 0x228   : > { %v1970_v57 = vpack.c.bf16 %v1594_v41, %v1592_v33 }
 0x22a   : > { %2006 = vst [vmem:[%s2838_s28 + $0x50] sm:$0xff] %v1970_v57   ;;  %v1347_v63 = vpop.f32.mrf.mxu0 }
 0x22b   : > { %v1348_v14 = vadd.f32 %v2657_v40, %v1347_v63 }
 0x22d   : > { %v1408_v23 = vmul.f32 0.1, %v1348_v14 }
 0x22f   : > { %v1440_v5 = vmax.f32 %v1348_v14, %v1408_v23 }
 0x230   : > { %v1556_v58 = vpop.f32.mrf.mxu1 }
 0x231   : > { %v1465_v15 = vpack.c.bf16 %v1440_v5, %v1439_v0  ;;  %v1557_v36 = vadd.f32 %v2830_v37, %v1556_v58 }
 0x233   : > { %1884 = vmatmul.msk.bf16.gmra.mxu1 %vm1014_vm4, %v1465_v15 }
 0x237   : > { %v1385_v46 = vpop.f32.mrf.mxu2 }
 0x238   : > { %v1558_v45 = vpop.f32.mrf.mxu1  ;;  %v1386_v50 = vadd.f32 %v2657_v40, %v1385_v46 }
 0x239   : > { %v1559_v24 = vadd.f32 %v2830_v37, %v1558_v45 }
 0x23a   : > { %v1423_v60 = vmul.f32 0.1, %v1386_v50 }
 0x23b   : > { %v1935_v28 = vpack.c.bf16 %v1559_v24, %v1557_v36 }
 0x23c   : > { %v1455_v43 = vmax.f32 %v1386_v50, %v1423_v60 }
 0x23d   : > { %1999 = vst [vmem:[%s2838_s28 + $0x18] sm:$0xff] %v1935_v28  }
 0x23f   : > { %v1387_v17 = vpop.f32.mrf.mxu2 }
 0x240   : > { %v1388_v31 = vadd.f32 %v2657_v40, %v1387_v17 }
 0x242   : > { %v1424_v35 = vmul.f32 0.1, %v1388_v31 }
 0x244   : > { %v1456_v25 = vmax.f32 %v1388_v31, %v1424_v35 }
 0x246   : > { %v1473_v22 = vpack.c.bf16 %v1456_v25, %v1455_v43 }
 0x248   : > { %1892 = vmatmul.msk.bf16.gmra.mxu3 %vm1014_vm4, %v1473_v22 }
 0x24b   : > { %v1596_v30 = vpop.f32.mrf.mxu3 }
 0x24c   : > { %v1597_v8 = vadd.f32 %v2830_v37, %v1596_v30 }
 0x251   : > { %v1350_v18 = vpop.f32.mrf.mxu0 }
 0x252   : > { %v1351_v27 = vadd.f32 %v2657_v40, %v1350_v18 }
 0x253   : > { %v1598_v38 = vpop.f32.mrf.mxu3 }
 0x254   : > { %v1599_v34 = vadd.f32 %v2830_v37, %v1598_v38  ;;  %v1409_v62 = vmul.f32 0.1, %v1351_v27 }
 0x256   : > { %v1975_v56 = vpack.c.bf16 %v1599_v34, %v1597_v8  ;;  %v1441_v26 = vmax.f32 %v1351_v27, %v1409_v62 }
 0x258   : > { %2007 = vst [vmem:[%s2838_s28 + $0x58] sm:$0xff] %v1975_v56  }
 0x259   : > { %v1352_v19 = vpop.f32.mrf.mxu0 }
 0x25a   : > { %v1353_v48 = vadd.f32 %v2657_v40, %v1352_v19 }
 0x25c   : > { %v1410_v49 = vmul.f32 0.1, %v1353_v48 }
 0x25e   : > { %v1442_v32 = vmax.f32 %v1353_v48, %v1410_v49 }
 0x25f   : > { %v1561_v21 = vpop.f32.mrf.mxu1 }
 0x260   : > { %v1390_v51 = vpop.f32.mrf.mxu2  ;;  %v1466_v44 = vpack.c.bf16 %v1442_v32, %v1441_v26  ;;  %v1562_v47 = vadd.f32 %v2830_v37, %v1561_v21 }
 0x261   : > { %v1391_v52 = vadd.f32 %v2657_v40, %v1390_v51 }
 0x262   : > { %1885 = vmatmul.msk.bf16.gmra.mxu1 %vm1014_vm4, %v1466_v44 }
 0x263   : > { %v1425_v13 = vmul.f32 0.1, %v1391_v52 }
 0x265   : > { %v1457_v4 = vmax.f32 %v1391_v52, %v1425_v13 }
 0x267   : > { %v1563_v54 = vpop.f32.mrf.mxu1 }
 0x268   : > { %v1564_v53 = vadd.f32 %v2830_v37, %v1563_v54  ;;  %v1392_v12 = vpop.f32.mrf.mxu2 }
 0x269   : > { %v1393_v2 = vadd.f32 %v2657_v40, %v1392_v12 }
 0x26a   : > { %v1940_v20 = vpack.c.bf16 %v1564_v53, %v1562_v47 }
 0x26b   : > { %v1426_v1 = vmul.f32 0.1, %v1393_v2 }
 0x26c   : > { %2000 = vst [vmem:[%s2838_s28 + $0x20] sm:$0xff] %v1940_v20  }
 0x26d   : > { %v1458_v29 = vmax.f32 %v1393_v2, %v1426_v1 }
 0x26f   : > { %v1474_v7 = vpack.c.bf16 %v1458_v29, %v1457_v4 }
 0x271   : > { %1893 = vmatmul.msk.bf16.gmra.mxu3 %vm1014_vm4, %v1474_v7 }
 0x272   : > { %1886 = vmatmul.msk.bf16.gmra.mxu1 %vm1014_vm4, %v2717_v39 }
 0x274   : > { %v1601_v11 = vpop.f32.mrf.mxu3 }
 0x275   : > { %v1602_v55 = vadd.f32 %v2830_v37, %v1601_v11 }
 0x27c   : > { %v1603_v61 = vpop.f32.mrf.mxu3 }
 0x27d   : > { %v1604_v6 = vadd.f32 %v2830_v37, %v1603_v61 }
 0x27f   : > { %v1980_v40 = vpack.c.bf16 %v1604_v6, %v1602_v55 }
 0x281   : > { %2008 = vst [vmem:[%s2838_s28 + $0x60] sm:$0xff] %v1980_v40   ;;  %v1566_v10 = vpop.f32.mrf.mxu1 }
 0x282   : > { %v1567_v59 = vadd.f32 %v2830_v37, %v1566_v10 }
 0x289   : > { %v1568_v3 = vpop.f32.mrf.mxu1 }
 0x28a   : > { %v1569_v42 = vadd.f32 %v2830_v37, %v1568_v3 }
 0x28c   : > { %v1945_v33 = vpack.c.bf16 %v1569_v42, %v1567_v59 }
 0x28e   : > { %2001 = vst [vmem:[%s2838_s28 + $0x28] sm:$0xff] %v1945_v33  }
 0x29d   : > { %v1606_v41 = vpop.f32.mrf.mxu3 }
 0x29e   : > { %v1607_v16 = vadd.f32 %v2830_v37, %v1606_v41 }
 0x2a5   : > { %v1608_v39 = vpop.f32.mrf.mxu3 }
 0x2a6   : > { %v1609_v57 = vadd.f32 %v2830_v37, %v1608_v39 }
 0x2a8   : > { %v1985_v63 = vpack.c.bf16 %v1609_v57, %v1607_v16 }
 0x2aa   : > { %2009 = vst [vmem:[%s2838_s28 + $0x68] sm:$0xff] %v1985_v63  }
 0x2b0   : > { %v1571_v9 = vpop.f32.mrf.mxu1 }
 0x2b1   : > { %v1572_v23 = vadd.f32 %v2830_v37, %v1571_v9 }
 0x2b8   : > { %v1573_v14 = vpop.f32.mrf.mxu1 }
 0x2b9   : > { %v1574_v0 = vadd.f32 %v2830_v37, %v1573_v14 }
 0x2bb   : > { %v1950_v5 = vpack.c.bf16 %v1574_v0, %v1572_v23 }
 0x2bd   : > { %2002 = vst [vmem:[%s2838_s28 + $0x30] sm:$0xff] %v1950_v5  }
 0x2cb   : > { %v1611_v58 = vpop.f32.mrf.mxu3 }
 0x2cc   : > { %v1612_v46 = vadd.f32 %v2830_v37, %v1611_v58 }
 0x2d3   : > { %v1613_v15 = vpop.f32.mrf.mxu3 }
 0x2d4   : > { %v1614_v45 = vadd.f32 %v2830_v37, %v1613_v15 }
 0x2d6   : > { %v1990_v36 = vpack.c.bf16 %v1614_v45, %v1612_v46 }
 0x2d8   : > { %2010 = vst [vmem:[%s2838_s28 + $0x70] sm:$0xff] %v1990_v36  }
 0x2df   : > { %v1576_v24 = vpop.f32.mrf.mxu1 }
 0x2e0   : > { %v1577_v50 = vadd.f32 %v2830_v37, %v1576_v24 }
 0x2e7   : > { %v1578_v28 = vpop.f32.mrf.mxu1 }
 0x2e8   : > { %v1579_v17 = vadd.f32 %v2830_v37, %v1578_v28 }
 0x2ea   : > { %v1955_v60 = vpack.c.bf16 %v1579_v17, %v1577_v50 }
 0x2ec   : > { %2003 = vst [vmem:[%s2838_s28 + $0x38] sm:$0xff] %v1955_v60  }
 0x2ef   : > { %v1581_v31 = vpop.f32.mrf.mxu1 }
 0x2f0   : > { %v1582_v25 = vadd.f32 %v2830_v37, %v1581_v31 }
 0x2f4   : > { %v1616_v35 = vpop.f32.mrf.mxu3 }
 0x2f5   : > { %v1617_v38 = vadd.f32 %v2830_v37, %v1616_v35 }
 0x2f7   : > { %v1583_v43 = vpop.f32.mrf.mxu1 }
 0x2f8   : > { %v1584_v22 = vadd.f32 %v2830_v37, %v1583_v43 }
 0x2fa   : > { %v1960_v30 = vpack.c.bf16 %v1584_v22, %v1582_v25 }
 0x2fc   : > { %2004 = vst [vmem:[%s2838_s28 + $0x40] sm:$0xff] %v1960_v30   ;;  %v1618_v18 = vpop.f32.mrf.mxu3 }
 0x2fd   : > { %v1619_v8 = vadd.f32 %v2830_v37, %v1618_v18 }
 0x2ff   : > { %v1995_v34 = vpack.c.bf16 %v1619_v8, %v1617_v38 }
 0x301   : > { %2011 = vst [vmem:[%s2838_s28 + $0x78] sm:$0xff] %v1995_v34  }
 0x302 PF: > { %s15_s20 = sadd.s32 1, %s2075_s20   ;;  %s2950_s18 = smov %s2071_s19 }
 0x303   : > { %p12_p5 = scmp.ge.s32.totalorder %s15_s20, 4   ;;  %s2951_s19 = smov %s2953_s21 }
 0x305   :  { %14 = sbr.rel (!%p12_p5) target bundleno = 2 (0x2), region = 71 }

</bundles_post_ra>
